<compile_context>
chip_gen: v7x
topology: tpu7x:2x2x1
jax: 0.10.0
libtpu: 0.0.40
codegen_flags: <defaults>
</compile_context>

<pallas_src>
import jax
import jax.numpy as jnp
import numpy as np
from jax.experimental import pallas as pl
from jax.experimental.pallas import tpu as pltpu

INPUT_DIM = 30
OUTPUT_DIM = 30
POSITION_DIM = 3
HIDDEN_DIM = 128
LN_EPS = 1e-5                               # PyTorch nn.LayerNorm default
DIN = INPUT_DIM + POSITION_DIM              # 33  (X = Z[:, :-1])
DZ = DIN + 1                                # 34  (raw Z width incl. energy col)
DOUT = OUTPUT_DIM + POSITION_DIM + 1        # 34


def _round_up(x, m):
    return ((x + m - 1) // m) * m


def _ln_centered(h):
    # h is already zero-mean per row (centering folded into the weights), so
    # LayerNorm reduces to h * rsqrt(mean(h^2) + eps).  Kept in f32.
    var = jnp.mean(jnp.square(h), axis=-1, keepdims=True)
    return h * jax.lax.rsqrt(var + LN_EPS)


def _silu(h):
    return h * jax.nn.sigmoid(h)


def _dyn_velocity_kernel(z_ref, w1_ref, w2_ref, wc_ref, we2_ref, o_ref):
    z = z_ref[...]  # (tile_n, 34) f32; the energy column hits the zero row of W1

    # ---- mlp_base: Linear -> LN -> SiLU -> Linear -> LN -> SiLU --------------
    h = jnp.dot(z.astype(jnp.bfloat16), w1_ref[...],
                preferred_element_type=jnp.float32)
    h = _silu(_ln_centered(h))
    h = jnp.dot(h.astype(jnp.bfloat16), w2_ref[...],
                preferred_element_type=jnp.float32)
    h = _silu(_ln_centered(h))

    # ---- mlp_base layer 6 fused with expr_head layer 0 (w_comb = w3 @ we1c),
    #      valid because there is no nonlinearity in between and H1 == 0 under
    #      message_passing=False ([H0, 0] @ We1 == H0 @ We1[:128, :]). ---------
    he = jnp.dot(h.astype(jnp.bfloat16), wc_ref[...],
                 preferred_element_type=jnp.float32)
    he = _silu(_ln_centered(he))
    fv = jnp.dot(he.astype(jnp.bfloat16), we2_ref[...],
                 preferred_element_type=jnp.float32)       # (tile_n, 30)

    # ---- energy_regularization (pos_velo == 0 under static_pos=True) --------
    ke = 0.5 * jnp.mean(jnp.square(fv), axis=1, keepdims=True)   # (tile_n, 1)

    # ---- dynamics = [feature_velo | pos_velo(=0) | kinetic_energy] ----------
    o_ref[:, :OUTPUT_DIM] = fv
    o_ref[:, OUTPUT_DIM:OUTPUT_DIM + POSITION_DIM] = jnp.zeros(
        (fv.shape[0], POSITION_DIM), dtype=jnp.float32)
    o_ref[:, OUTPUT_DIM + POSITION_DIM:] = ke


def preprocess_params(params):
    """Exact offline rewrites (biases are zero, LN affine is identity in this
    module, so these are lossless modulo FP rounding):
      * fold LN mean-centering into the preceding Linear weights,
      * keep only the live top half of We1 (H1 == 0),
      * compose w3 @ we1c into a single matrix (no nonlinearity in between),
      * append a zero row to W1 so the kernel consumes Z (incl. energy col),
      * cast all weights to bf16 for the MXU (accumulation stays f32)."""
    w1, w2, w3, we1, we2 = params
    w1c = w1 - jnp.mean(w1, axis=1, keepdims=True)
    w2c = w2 - jnp.mean(w2, axis=1, keepdims=True)
    we1_top = we1[:HIDDEN_DIM, :]
    we1c = we1_top - jnp.mean(we1_top, axis=1, keepdims=True)
    # Row-means of (w3 @ we1c) are zero because we1c's rows are zero-mean, so
    # the LN centering of expr_head's first LayerNorm remains folded correctly.
    w_comb = jnp.dot(w3, we1c)
    w1z = jnp.concatenate([w1c, jnp.zeros((1, HIDDEN_DIM), w1c.dtype)], axis=0)
    bf16 = lambda a: a.astype(jnp.bfloat16)
    return bf16(w1z), bf16(w2c), bf16(w_comb), bf16(we2)


def dyn_velocity_forward(t, z, kparams, *, tile_n=None):
    """z: [N, input_dim + position_dim + 1] -> [N, output_dim + position_dim + 1]."""
    del t  # unused: expr_autonomous=True and static_pos=True
    w1z, w2c, w_comb, we2 = kparams
    n = z.shape[0]
    if tile_n is None:
        # Weights are ~110 KB bf16 total, so VMEM is never the constraint; fat
        # row tiles amortize the ~0.35us per-grid-step overhead.  Cap at 1024
        # so large N gives a multi-step even "parallel" grid (both TCs on v7x).
        tile_n = min(1024, _round_up(n, 8))
    n_pad = _round_up(n, tile_n)
    if n_pad != n:
        # Zero-pad ragged N; padded rows are harmless (LN of zeros -> zeros)
        # and are sliced off below.
        z = jnp.pad(z, ((0, n_pad - n), (0, 0)))
    grid = n_pad // tile_n

    weight_elems = DZ * HIDDEN_DIM + 2 * HIDDEN_DIM * HIDDEN_DIM + HIDDEN_DIM * OUTPUT_DIM
    cost = pl.CostEstimate(
        flops=2 * n_pad * weight_elems,
        transcendentals=n_pad * (3 * HIDDEN_DIM + 4),
        bytes_accessed=n_pad * (DZ + DOUT) * 4 + 2 * weight_elems,
    )

    full = lambda i: (0, 0)
    out = pl.pallas_call(
        _dyn_velocity_kernel,
        out_shape=jax.ShapeDtypeStruct((n_pad, DOUT), jnp.float32),
        grid_spec=pltpu.PrefetchScalarGridSpec(
            num_scalar_prefetch=0,
            grid=(grid,),
            in_specs=[
                pl.BlockSpec((tile_n, DZ), lambda i: (i, 0)),        # Z rows
                pl.BlockSpec((DZ, HIDDEN_DIM), full),                # mlp_base.0 (+0 row)
                pl.BlockSpec((HIDDEN_DIM, HIDDEN_DIM), full),        # mlp_base.3
                pl.BlockSpec((HIDDEN_DIM, HIDDEN_DIM), full),        # mlp_base.6 @ expr_head.0
                pl.BlockSpec((HIDDEN_DIM, OUTPUT_DIM), full),        # expr_head.3
            ],
            out_specs=pl.BlockSpec((tile_n, DOUT), lambda i: (i, 0)),
        ),
        compiler_params=pltpu.CompilerParams(
            dimension_semantics=("parallel",)),
        cost_estimate=cost,
    )(z, w1z, w2c, w_comb, we2)
    return out[:n] if n_pad != n else out


def init_params(key):
    """Kaiming-normal (relu) Linear weights; biases zero (folded out)."""
    def kaiming(k, fan_in, fan_out):
        std = (2.0 / fan_in) ** 0.5
        return std * jax.random.normal(k, (fan_in, fan_out), dtype=jnp.float32)

    k1, k2, k3, k4, k5 = jax.random.split(key, 5)
    return (
        kaiming(k1, DIN, HIDDEN_DIM),              # mlp_base Linear(33, 128)
        kaiming(k2, HIDDEN_DIM, HIDDEN_DIM),       # mlp_base Linear(128, 128)
        kaiming(k3, HIDDEN_DIM, HIDDEN_DIM),       # mlp_base Linear(128, 128)
        kaiming(k4, 2 * HIDDEN_DIM, HIDDEN_DIM),   # expr_head Linear(256, 128)
        kaiming(k5, HIDDEN_DIM, OUTPUT_DIM),       # expr_head Linear(128, 30)
    )


def reference_forward(z, params):
    """Pure-JAX f32 reference of the original (un-rewritten) PyTorch forward."""
    w1, w2, w3, we1, we2 = params

    def ln(h):
        mu = jnp.mean(h, axis=-1, keepdims=True)
        var = jnp.mean(jnp.square(h - mu), axis=-1, keepdims=True)
        return (h - mu) * jax.lax.rsqrt(var + LN_EPS)

    x = z[:, :-1]
    h = _silu(ln(x @ w1))
    h = _silu(ln(h @ w2))
    h0 = h @ w3
    hcat = jnp.concatenate([h0, jnp.zeros_like(h0)], axis=1)
    he = _silu(ln(hcat @ we1))
    fv = he @ we2
    pos_velo = jnp.zeros((x.shape[0], POSITION_DIM), dtype=fv.dtype)
    ke = 0.5 * jnp.mean(jnp.square(fv), axis=1, keepdims=True)
    return jnp.concatenate([fv, pos_velo, ke], axis=1)


if __name__ == "__main__":
    key = jax.random.PRNGKey(0)
    k_param, k_z = jax.random.split(key)

    params = init_params(k_param)
    kparams = preprocess_params(params)
    t = jnp.float32(0.0)

    # N=200 exercises the ragged-N padding path (single fat tile);
    # N=2048 exercises the multi-step parallel grid (tile_n=1024, grid=2).
    for N in (200, 2048):
        kz = jax.random.fold_in(k_z, N)
        z = jax.random.normal(kz, (N, DZ), dtype=jnp.float32)

        out = jax.block_until_ready(dyn_velocity_forward(t, z, kparams))
        ref = reference_forward(z, params)

        assert out.shape == (N, DOUT)
        out_np, ref_np = np.asarray(out), np.asarray(ref)
        assert np.all(np.isfinite(out_np))
        # Elementwise tolerance sized for bf16-operand matmuls (f32 accumulate)
        # vs. the pure-f32 reference; the offline folds themselves are exact.
        np.testing.assert_allclose(out_np, ref_np, rtol=1e-1, atol=1e-1)
        # Tighter aggregate check: relative Frobenius error well inside the
        # bf16 quantization envelope.
        rel = np.linalg.norm(out_np - ref_np) / np.linalg.norm(ref_np)
        assert rel < 3e-2, f"relative Frobenius error too large: {rel}"

    print("KERNEL_OK")
</pallas_src>

<mosaic_0001>
module attributes {stable_mosaic.version = 11 : i64} {
  func.func @_dyn_velocity_kernel(%arg0: i32, %arg1: memref<200x34xf32, #tpu.memory_space<vmem>>, %arg2: memref<34x128xbf16, #tpu.memory_space<vmem>>, %arg3: memref<128x128xbf16, #tpu.memory_space<vmem>>, %arg4: memref<128x128xbf16, #tpu.memory_space<vmem>>, %arg5: memref<128x30xbf16, #tpu.memory_space<vmem>>, %arg6: memref<200x34xf32, #tpu.memory_space<vmem>>) attributes {dimension_semantics = [#tpu.dimension_semantics<parallel>], iteration_bounds = array<i64: 1>, scalar_prefetch = 0 : i64, scratch_operands = 0 : i64, tpu.core_type = #tpu.core_type<tc>, window_params = [{transform_indices = @transform_0, window_bounds = array<i64: 200, 34>}, {pipeline_mode = #tpu.pipeline_mode<synchronous>, transform_indices = @transform_1, window_bounds = array<i64: 34, 128>}, {pipeline_mode = #tpu.pipeline_mode<synchronous>, transform_indices = @transform_2, window_bounds = array<i64: 128, 128>}, {pipeline_mode = #tpu.pipeline_mode<synchronous>, transform_indices = @transform_3, window_bounds = array<i64: 128, 128>}, {pipeline_mode = #tpu.pipeline_mode<synchronous>, transform_indices = @transform_4, window_bounds = array<i64: 128, 30>}, {transform_indices = @transform_5, window_bounds = array<i64: 200, 34>}]} {
    %c0 = arith.constant 0 : index
    %c0_0 = arith.constant 0 : index
    %0 = vector.load %arg1[%c0, %c0_0] : memref<200x34xf32, #tpu.memory_space<vmem>>, vector<200x34xf32>
    %1 = arith.truncf %0 : vector<200x34xf32> to vector<200x34xbf16>
    %c0_1 = arith.constant 0 : index
    %c0_2 = arith.constant 0 : index
    %2 = vector.load %arg2[%c0_1, %c0_2] : memref<34x128xbf16, #tpu.memory_space<vmem>>, vector<34x128xbf16>
    %cst = arith.constant dense<0.000000e+00> : vector<200x128xf32>
    %3 = tpu.matmul %1, %2, %cst {dimension_numbers = #tpu.dot_dimension_numbers<[1], [0], [0], [1], [0, 0, 1, 1], [], []>} : vector<200x34xbf16>, vector<34x128xbf16>, vector<200x128xf32> -> vector<200x128xf32>
    %4 = arith.mulf %3, %3 : vector<200x128xf32>
    %cst_3 = arith.constant dense<0.000000e+00> : vector<200xf32>
    %5 = vector.multi_reduction <add>, %4, %cst_3 [1] : vector<200x128xf32> to vector<200xf32>
    %6 = vector.shape_cast %5 : vector<200xf32> to vector<200x1xf32>
    %cst_4 = arith.constant 1.280000e+02 : f32
    %7 = vector.broadcast %cst_4 : f32 to vector<200x1xf32>
    %8 = arith.divf %6, %7 : vector<200x1xf32>
    %cst_5 = arith.constant 9.99999974E-6 : f32
    %9 = vector.broadcast %cst_5 : f32 to vector<200x1xf32>
    %10 = arith.addf %8, %9 : vector<200x1xf32>
    %11 = math.rsqrt %10 : vector<200x1xf32>
    %12 = vector.broadcast %11 : vector<200x1xf32> to vector<200x128xf32>
    %13 = arith.mulf %3, %12 : vector<200x128xf32>
    %14 = arith.negf %13 : vector<200x128xf32>
    %15 = math.exp %14 : vector<200x128xf32>
    %cst_6 = arith.constant 1.000000e+00 : f32
    %16 = vector.broadcast %cst_6 : f32 to vector<200x128xf32>
    %17 = arith.addf %16, %15 : vector<200x128xf32>
    %18 = arith.divf %16, %17 : vector<200x128xf32>
    %19 = arith.mulf %13, %18 : vector<200x128xf32>
    %20 = arith.truncf %19 : vector<200x128xf32> to vector<200x128xbf16>
    %c0_7 = arith.constant 0 : index
    %c0_8 = arith.constant 0 : index
    %21 = vector.load %arg3[%c0_7, %c0_8] : memref<128x128xbf16, #tpu.memory_space<vmem>>, vector<128x128xbf16>
    %cst_9 = arith.constant dense<0.000000e+00> : vector<200x128xf32>
    %22 = tpu.matmul %20, %21, %cst_9 {dimension_numbers = #tpu.dot_dimension_numbers<[1], [0], [0], [1], [0, 0, 1, 1], [], []>} : vector<200x128xbf16>, vector<128x128xbf16>, vector<200x128xf32> -> vector<200x128xf32>
    %23 = arith.mulf %22, %22 : vector<200x128xf32>
    %cst_10 = arith.constant dense<0.000000e+00> : vector<200xf32>
    %24 = vector.multi_reduction <add>, %23, %cst_10 [1] : vector<200x128xf32> to vector<200xf32>
    %25 = vector.shape_cast %24 : vector<200xf32> to vector<200x1xf32>
    %cst_11 = arith.constant 1.280000e+02 : f32
    %26 = vector.broadcast %cst_11 : f32 to vector<200x1xf32>
    %27 = arith.divf %25, %26 : vector<200x1xf32>
    %cst_12 = arith.constant 9.99999974E-6 : f32
    %28 = vector.broadcast %cst_12 : f32 to vector<200x1xf32>
    %29 = arith.addf %27, %28 : vector<200x1xf32>
    %30 = math.rsqrt %29 : vector<200x1xf32>
    %31 = vector.broadcast %30 : vector<200x1xf32> to vector<200x128xf32>
    %32 = arith.mulf %22, %31 : vector<200x128xf32>
    %33 = arith.negf %32 : vector<200x128xf32>
    %34 = math.exp %33 : vector<200x128xf32>
    %cst_13 = arith.constant 1.000000e+00 : f32
    %35 = vector.broadcast %cst_13 : f32 to vector<200x128xf32>
    %36 = arith.addf %35, %34 : vector<200x128xf32>
    %37 = arith.divf %35, %36 : vector<200x128xf32>
    %38 = arith.mulf %32, %37 : vector<200x128xf32>
    %39 = arith.truncf %38 : vector<200x128xf32> to vector<200x128xbf16>
    %c0_14 = arith.constant 0 : index
    %c0_15 = arith.constant 0 : index
    %40 = vector.load %arg4[%c0_14, %c0_15] : memref<128x128xbf16, #tpu.memory_space<vmem>>, vector<128x128xbf16>
    %cst_16 = arith.constant dense<0.000000e+00> : vector<200x128xf32>
    %41 = tpu.matmul %39, %40, %cst_16 {dimension_numbers = #tpu.dot_dimension_numbers<[1], [0], [0], [1], [0, 0, 1, 1], [], []>} : vector<200x128xbf16>, vector<128x128xbf16>, vector<200x128xf32> -> vector<200x128xf32>
    %42 = arith.mulf %41, %41 : vector<200x128xf32>
    %cst_17 = arith.constant dense<0.000000e+00> : vector<200xf32>
    %43 = vector.multi_reduction <add>, %42, %cst_17 [1] : vector<200x128xf32> to vector<200xf32>
    %44 = vector.shape_cast %43 : vector<200xf32> to vector<200x1xf32>
    %cst_18 = arith.constant 1.280000e+02 : f32
    %45 = vector.broadcast %cst_18 : f32 to vector<200x1xf32>
    %46 = arith.divf %44, %45 : vector<200x1xf32>
    %cst_19 = arith.constant 9.99999974E-6 : f32
    %47 = vector.broadcast %cst_19 : f32 to vector<200x1xf32>
    %48 = arith.addf %46, %47 : vector<200x1xf32>
    %49 = math.rsqrt %48 : vector<200x1xf32>
    %50 = vector.broadcast %49 : vector<200x1xf32> to vector<200x128xf32>
    %51 = arith.mulf %41, %50 : vector<200x128xf32>
    %52 = arith.negf %51 : vector<200x128xf32>
    %53 = math.exp %52 : vector<200x128xf32>
    %cst_20 = arith.constant 1.000000e+00 : f32
    %54 = vector.broadcast %cst_20 : f32 to vector<200x128xf32>
    %55 = arith.addf %54, %53 : vector<200x128xf32>
    %56 = arith.divf %54, %55 : vector<200x128xf32>
    %57 = arith.mulf %51, %56 : vector<200x128xf32>
    %58 = arith.truncf %57 : vector<200x128xf32> to vector<200x128xbf16>
    %c0_21 = arith.constant 0 : index
    %c0_22 = arith.constant 0 : index
    %59 = vector.load %arg5[%c0_21, %c0_22] : memref<128x30xbf16, #tpu.memory_space<vmem>>, vector<128x30xbf16>
    %cst_23 = arith.constant dense<0.000000e+00> : vector<200x30xf32>
    %60 = tpu.matmul %58, %59, %cst_23 {dimension_numbers = #tpu.dot_dimension_numbers<[1], [0], [0], [1], [0, 0, 1, 1], [], []>} : vector<200x128xbf16>, vector<128x30xbf16>, vector<200x30xf32> -> vector<200x30xf32>
    %61 = arith.mulf %60, %60 : vector<200x30xf32>
    %cst_24 = arith.constant dense<0.000000e+00> : vector<200xf32>
    %62 = vector.multi_reduction <add>, %61, %cst_24 [1] : vector<200x30xf32> to vector<200xf32>
    %63 = vector.shape_cast %62 : vector<200xf32> to vector<200x1xf32>
    %cst_25 = arith.constant 3.000000e+01 : f32
    %64 = vector.broadcast %cst_25 : f32 to vector<200x1xf32>
    %65 = arith.divf %63, %64 : vector<200x1xf32>
    %cst_26 = arith.constant 5.000000e-01 : f32
    %66 = vector.broadcast %cst_26 : f32 to vector<200x1xf32>
    %67 = arith.mulf %66, %65 : vector<200x1xf32>
    %c0_27 = arith.constant 0 : index
    %c0_28 = arith.constant 0 : index
    %68 = vector.load %arg6[%c0_27, %c0_28] : memref<200x34xf32, #tpu.memory_space<vmem>>, vector<200x30xf32>
    tpu.vector_store %arg6[%c0_27, %c0_28], %60 {strides = array<i32>} : memref<200x34xf32, #tpu.memory_space<vmem>>, vector<200x30xf32>,
    %cst_29 = arith.constant 0.000000e+00 : f32
    %69 = vector.broadcast %cst_29 : f32 to vector<200x3xf32>
    %c0_30 = arith.constant 0 : index
    %c30 = arith.constant 30 : index
    %70 = vector.load %arg6[%c0_30, %c30] : memref<200x34xf32, #tpu.memory_space<vmem>>, vector<200x3xf32>
    tpu.vector_store %arg6[%c0_30, %c30], %69 {strides = array<i32>} : memref<200x34xf32, #tpu.memory_space<vmem>>, vector<200x3xf32>,
    %c0_31 = arith.constant 0 : index
    %c33 = arith.constant 33 : index
    %71 = vector.load %arg6[%c0_31, %c33] : memref<200x34xf32, #tpu.memory_space<vmem>>, vector<200x1xf32>
    tpu.vector_store %arg6[%c0_31, %c33], %67 {strides = array<i32>} : memref<200x34xf32, #tpu.memory_space<vmem>>, vector<200x1xf32>,
    return
  }
  func.func @transform_0(%arg0: i32) -> (i32, i32) {
    %c0_i32 = arith.constant 0 : i32
    %c0_i32_0 = arith.constant 0 : i32
    return %arg0, %c0_i32 : i32, i32
  }
  func.func @transform_1(%arg0: i32) -> (i32, i32) {
    %c0_i32 = arith.constant 0 : i32
    %c0_i32_0 = arith.constant 0 : i32
    %c0_i32_1 = arith.constant 0 : i32
    return %c0_i32, %c0_i32_0 : i32, i32
  }
  func.func @transform_2(%arg0: i32) -> (i32, i32) {
    %c0_i32 = arith.constant 0 : i32
    %c0_i32_0 = arith.constant 0 : i32
    %c0_i32_1 = arith.constant 0 : i32
    return %c0_i32, %c0_i32_0 : i32, i32
  }
  func.func @transform_3(%arg0: i32) -> (i32, i32) {
    %c0_i32 = arith.constant 0 : i32
    %c0_i32_0 = arith.constant 0 : i32
    %c0_i32_1 = arith.constant 0 : i32
    return %c0_i32, %c0_i32_0 : i32, i32
  }
  func.func @transform_4(%arg0: i32) -> (i32, i32) {
    %c0_i32 = arith.constant 0 : i32
    %c0_i32_0 = arith.constant 0 : i32
    %c0_i32_1 = arith.constant 0 : i32
    return %c0_i32, %c0_i32_0 : i32, i32
  }
  func.func @transform_5(%arg0: i32) -> (i32, i32) {
    %c0_i32 = arith.constant 0 : i32
    %c0_i32_0 = arith.constant 0 : i32
    return %arg0, %c0_i32 : i32, i32
  }
}

</mosaic_0001>

<bundles_post_ra>
// kernel: tpu_custom_call.1
= control target key start
LH: loop header
LB: loop body
LE: loop exit
PB: predicated region body
PF: predicated region fallthrough
CT: control target
= control target key end

     0   :  { %v3133_v0 = vmov 0.0   ;;  %vm3134_vm0 = vmmov 0   ;;  %vm119_vm1 = vcmask 1040384   ;;  %vm79_vm2 = vcmask 277504   ;;  %s4577_s1 = inlined_call_operand.vmem [shape: bf16[34,128], index: 1, kind: input, shape index: {}]   ;;  %s4578_s0 = inlined_call_operand.vmem [shape: f32[200,34], index: 0, kind: input, shape index: {}]   ;;  %s4579_s2 = inlined_call_operand.vmem [shape: bf16[128,128], index: 2, kind: input, shape index: {}]   ;;  %s4580_s3 = inlined_call_operand.vmem [shape: bf16[128,128], index: 3, kind: input, shape index: {}]   ;;  %s4581_s4 = inlined_call_operand.vmem [shape: bf16[128,30], index: 4, kind: input, shape index: {}]   ;;  %s4582_s5 = inlined_call_operand.vmem [shape: f32[200,34], index: 5, kind: output, shape index: {}]  }
   0x1   :  { %2376 = vmatprep.subr.bf16.mxu0 %v3133_v0  ;;  %v2656_v1 = vld [vmem:[%s4577_s1] sm:$0xff]   ;;  %2382 = vmatprep.mubr.msk.bf16.mxu0 %vm3134_vm0, %v3133_v0  ;;  %v2657_v2 = vld [vmem:[%s4577_s1 + $0x8] sm:$0xff]   ;;  %v2658_v3 = vld [vmem:[%s4577_s1 + $0x10] ss:$0 sps:$4 sm:$0x11]   ;;  %vm1974_vm3 = vcmask 244736  }
   0x2   :  { %2434 = vmatprep.subr.bf16.mxu1 %v3133_v0  ;;  %2450 = vmatprep.mubr.msk.bf16.mxu1 %vm3134_vm0, %v3133_v0  ;;  %v21_v4 = vld [vmem:[%s4578_s0] sm:$0xff]  ;;  %v22_v5 = vld [vmem:[%s4578_s0 + $0x8] sm:$0xff]  ;;  %v121_v6 = vsel %vm119_vm1, %v2658_v3, 0  ;;  %v23_v8 = vld [vmem:[%s4578_s0 + $0x10] sm:$0xff]  ;;  %vm2126_vm4 = vcmask 269552   ;;  %vm2152_vm5 = vcmask 277768  }
   0x3   :  { %2377 = vmatpush3.bf16.msra.mxu0 %v2656_v1  ;;  %v46_v7 = vpack.c.bf16 %v22_v5, %v21_v4  ;;  %v24_v9 = vld [vmem:[%s4578_s0 + $0x18] sm:$0xff]  ;;  %v25_v11 = vld [vmem:[%s4578_s0 + $0x20] sm:$0xff]  ;;  %v26_v12 = vld [vmem:[%s4578_s0 + $0x28] sm:$0xff] }
   0x4   :  { %2378 = vmatprep.subr.bf16.mxu0 %v3133_v0  ;;  %v47_v10 = vpack.c.bf16 %v24_v9, %v23_v8  ;;  %v48_v13 = vpack.c.bf16 %v26_v12, %v25_v11  ;;  %v27_v14 = vld [vmem:[%s4578_s0 + $0x30] sm:$0xff]  ;;  %v28_v15 = vld [vmem:[%s4578_s0 + $0x38] sm:$0xff]  ;;  %v29_v17 = vld [vmem:[%s4578_s0 + $0x40] sm:$0xff] }
   0x5   :  { %v49_v16 = vpack.c.bf16 %v28_v15, %v27_v14  ;;  %v30_v18 = vld [vmem:[%s4578_s0 + $0x48] sm:$0xff]  ;;  %v31_v20 = vld [vmem:[%s4578_s0 + $0x50] sm:$0xff]  ;;  %v32_v21 = vld [vmem:[%s4578_s0 + $0x58] sm:$0xff] }
   0x6   :  { %v50_v19 = vpack.c.bf16 %v30_v18, %v29_v17  ;;  %v51_v22 = vpack.c.bf16 %v32_v21, %v31_v20  ;;  %v33_v23 = vld [vmem:[%s4578_s0 + $0x60] sm:$0xff]  ;;  %v34_v24 = vld [vmem:[%s4578_s0 + $0x68] sm:$0xff]  ;;  %v35_v26 = vld [vmem:[%s4578_s0 + $0x70] sm:$0xff] }
   0x7   :  { %2379 = vmatpush3.bf16.msra.mxu0 %v2657_v2  ;;  %v52_v25 = vpack.c.bf16 %v34_v24, %v33_v23  ;;  %v36_v27 = vld [vmem:[%s4578_s0 + $0x78] sm:$0xff]  ;;  %v37_v29 = vld [vmem:[%s4578_s0 + $0x80] sm:$0xff]  ;;  %v38_v30 = vld [vmem:[%s4578_s0 + $0x88] sm:$0xff] }
   0x8   :  { %2380 = vmatprep.subr.bf16.mxu0 %v3133_v0  ;;  %v53_v28 = vpack.c.bf16 %v36_v27, %v35_v26  ;;  %v54_v31 = vpack.c.bf16 %v38_v30, %v37_v29  ;;  %v39_v32 = vld [vmem:[%s4578_s0 + $0x90] sm:$0xff]  ;;  %v40_v33 = vld [vmem:[%s4578_s0 + $0x98] sm:$0xff]  ;;  %v41_v35 = vld [vmem:[%s4578_s0 + $0xa0] sm:$0xff] }
   0x9   :  { %v55_v34 = vpack.c.bf16 %v40_v33, %v39_v32  ;;  %v42_v36 = vld [vmem:[%s4578_s0 + $0xa8] sm:$0xff]  ;;  %v43_v38 = vld [vmem:[%s4578_s0 + $0xb0] sm:$0xff]  ;;  %v44_v39 = vld [vmem:[%s4578_s0 + $0xb8] sm:$0xff] }
   0xa   :  { %v56_v37 = vpack.c.bf16 %v42_v36, %v41_v35  ;;  %v57_v40 = vpack.c.bf16 %v44_v39, %v43_v38  ;;  %v45_v41 = vld [vmem:[%s4578_s0 + $0xc0] sm:$0xff]  ;;  %v2660_v11 = vld [vmem:[%s4579_s2 + $0x8] sm:$0xff]   ;;  %v2661_v18 = vld [vmem:[%s4579_s2 + $0x10] sm:$0xff]  }
   0xb   :  { %2381 = vmatpush3.bf16.msra.mxu0 %v121_v6  ;;  %v58_v42 = vpack.c.bf16 %v45_v41, %v45_v41  ;;  %v2663_v26 = vld [vmem:[%s4579_s2 + $0x20] sm:$0xff]   ;;  %v2664_v27 = vld [vmem:[%s4579_s2 + $0x28] sm:$0xff]   ;;  %v2666_v35 = vld [vmem:[%s4579_s2 + $0x38] sm:$0xff]  }
   0xc   :  { %2502 = vmatprep.subr.bf16.mxu0 %v3133_v0 }
   0xe   :  { %2383 = vmatmul.mubr.msk.bf16.vlgmr.msra.gmra.mrb[0].mxu0 %vm79_vm2, %v46_v7 }
   0xf   :  { %2386 = vmatprep.mubr.msk.bf16.mxu0 %vm3134_vm0, %v3133_v0 }
  0x16   :  { %2387 = vmatmul.mubr.msk.bf16.gmra.mrb[4].mxu0 %vm79_vm2, %v47_v10  ;;  %v2659_v10 = vld [vmem:[%s4579_s2] sm:$0xff]  }
  0x17   :  { %2390 = vmatprep.mubr.msk.bf16.mxu0 %vm3134_vm0, %v3133_v0  ;;  %2435 = vmatpush3.bf16.msra.mxu1 %v2659_v10 }
  0x18   :  { %2436 = vmatprep.subr.bf16.mxu1 %v3133_v0 }
  0x1b   :  { %2437 = vmatpush3.bf16.msra.mxu1 %v2660_v11 }
  0x1c   :  { %2438 = vmatprep.subr.bf16.mxu1 %v3133_v0 }
  0x1e   :  { %2391 = vmatmul.mubr.msk.bf16.gmra.mrb[8].mxu0 %vm79_vm2, %v48_v13 }
  0x1f   :  { %2394 = vmatprep.mubr.msk.bf16.mxu0 %vm3134_vm0, %v3133_v0  ;;  %2439 = vmatpush3.bf16.msra.mxu1 %v2661_v18 }
  0x20   :  { %2440 = vmatprep.subr.bf16.mxu1 %v3133_v0 }
  0x26   :  { %2395 = vmatmul.mubr.msk.bf16.gmra.mrb[12].mxu0 %vm79_vm2, %v49_v16 }
  0x27   :  { %2398 = vmatprep.mubr.msk.bf16.mxu0 %vm3134_vm0, %v3133_v0 }
  0x2e   :  { %2399 = vmatmul.mubr.msk.bf16.gmra.mrb[16].mxu0 %vm79_vm2, %v50_v19  ;;  %v2662_v19 = vld [vmem:[%s4579_s2 + $0x18] sm:$0xff]  }
  0x2f   :  { %2402 = vmatprep.mubr.msk.bf16.mxu0 %vm3134_vm0, %v3133_v0  ;;  %2441 = vmatpush3.bf16.msra.mxu1 %v2662_v19 }
  0x30   :  { %2442 = vmatprep.subr.bf16.mxu1 %v3133_v0 }
  0x33   :  { %2443 = vmatpush3.bf16.msra.mxu1 %v2663_v26 }
  0x34   :  { %2444 = vmatprep.subr.bf16.mxu1 %v3133_v0 }
  0x36   :  { %2403 = vmatmul.mubr.msk.bf16.gmra.mrb[20].mxu0 %vm79_vm2, %v51_v22 }
  0x37   :  { %2406 = vmatprep.mubr.msk.bf16.mxu0 %vm3134_vm0, %v3133_v0  ;;  %2445 = vmatpush3.bf16.msra.mxu1 %v2664_v27 }
  0x38   :  { %2446 = vmatprep.subr.bf16.mxu1 %v3133_v0 }
  0x3e   :  { %2407 = vmatmul.mubr.msk.bf16.gmra.mrb[24].mxu0 %vm79_vm2, %v52_v25 }
  0x3f   :  { %2410 = vmatprep.mubr.msk.bf16.mxu0 %vm3134_vm0, %v3133_v0 }
  0x46   :  { %2411 = vmatmul.mubr.msk.bf16.gmra.mrb[28].mxu0 %vm79_vm2, %v53_v28 }
  0x47   :  { %2414 = vmatprep.mubr.msk.bf16.mxu0 %vm3134_vm0, %v3133_v0 }
  0x4e   :  { %2415 = vmatmul.mubr.msk.bf16.gmra.mrb[32].mxu0 %vm79_vm2, %v54_v31 }
  0x4f   :  { %2418 = vmatprep.mubr.msk.bf16.mxu0 %vm3134_vm0, %v3133_v0 }
  0x56   :  { %2419 = vmatmul.mubr.msk.bf16.gmra.mrb[36].mxu0 %vm79_vm2, %v55_v34  ;;  %v2665_v34 = vld [vmem:[%s4579_s2 + $0x30] sm:$0xff]  }
  0x57   :  { %2422 = vmatprep.mubr.msk.bf16.mxu0 %vm3134_vm0, %v3133_v0  ;;  %2447 = vmatpush3.bf16.msra.mxu1 %v2665_v34 }
  0x58   :  { %2448 = vmatprep.subr.bf16.mxu1 %v3133_v0 }
  0x5b   :  { %2449 = vmatpush3.bf16.msra.mxu1 %v2666_v35 }
  0x5c   :  { %2638 = vmatprep.subr.bf16.mxu1 %v3133_v0 }
  0x5e   :  { %2423 = vmatmul.mubr.msk.bf16.gmra.mrb[40].mxu0 %vm79_vm2, %v56_v37 }
  0x5f   :  { %2426 = vmatprep.mubr.msk.bf16.mxu0 %vm3134_vm0, %v3133_v0 }
  0x66   :  { %2427 = vmatmul.mubr.msk.bf16.gmra.mrb[44].mxu0 %vm79_vm2, %v57_v40 }
  0x67   :  { %2430 = vmatprep.mubr.msk.bf16.mxu0 %vm3134_vm0, %v3133_v0 }
  0x6e   :  { %2431 = vmatmul.mubr.msk.bf16.gmra.mrb[48].mxu0 %vm79_vm2, %v58_v42 }
  0x6f   :  { %2518 = vmatprep.mubr.msk.bf16.mxu0 %vm3134_vm0, %v3133_v0 }
  0xe1   :  { %v3297_v43 = vpop.f32.mrb[0].mxu0 }
  0xe2   :  { %v2384_v44 = vpop.f32.mrb[1].mxu0  ;;  %v259_v45 = vmul.f32 %v3297_v43, %v3297_v43 }
  0xe3   :  { %v3301_v46 = vpop.f32.mrb[2].mxu0 }
  0xe4   :  { %284 = vadd.xlane.f32.xlu0 %v259_v45  ;;  %v2385_v47 = vpop.f32.mrb[3].mxu0  ;;  %v260_v48 = vmul.f32 %v3301_v46, %v3301_v46 }
  0xe8   :  { %286 = vadd.xlane.f32.xlu0 %v260_v48 }
  0xe9   :  { %v3305_v49 = vpop.f32.mrb[4].mxu0 }
  0xea   :  { %v2388_v50 = vpop.f32.mrb[5].mxu0  ;;  %v261_v51 = vmul.f32 %v3305_v49, %v3305_v49 }
  0xeb   :  { %v3309_v52 = vpop.f32.mrb[6].mxu0 }
  0xec   :  { %288 = vadd.xlane.f32.xlu1 %v261_v51  ;;  %v2389_v53 = vpop.f32.mrb[7].mxu0  ;;  %v262_v54 = vmul.f32 %v3309_v52, %v3309_v52 }
  0xf0   :  { %290 = vadd.xlane.f32.xlu1 %v262_v54 }
  0xf1   :  { %v3313_v55 = vpop.f32.mrb[8].mxu0 }
  0xf2   :  { %v2392_v56 = vpop.f32.mrb[9].mxu0  ;;  %v263_v57 = vmul.f32 %v3313_v55, %v3313_v55 }
  0xf3   :  { %v3317_v58 = vpop.f32.mrb[10].mxu0 }
  0xf4   :  { %292 = vadd.xlane.f32.xlu0 %v263_v57  ;;  %v2393_v59 = vpop.f32.mrb[11].mxu0  ;;  %v264_v60 = vmul.f32 %v3317_v58, %v3317_v58 }
  0xf6   :  { %294 = vadd.xlane.f32.xlu1 %v264_v60 }
  0xf9   :  { %v3321_v61 = vpop.f32.mrb[12].mxu0 }
  0xfa   :  { %v2396_v62 = vpop.f32.mrb[13].mxu0  ;;  %v265_v63 = vmul.f32 %v3321_v61, %v3321_v61 }
  0xfb   :  { %v3325_v1 = vpop.f32.mrb[14].mxu0 }
  0xfc   :  { %296 = vadd.xlane.f32.xlu0 %v265_v63  ;;  %v2397_v2 = vpop.f32.mrb[15].mxu0  ;;  %v266_v3 = vmul.f32 %v3325_v1, %v3325_v1 }
  0xfe   :  { %298 = vadd.xlane.f32.xlu1 %v266_v3 }
 0x101   :  { %v3329_v4 = vpop.f32.mrb[16].mxu0 }
 0x102   :  { %v2400_v5 = vpop.f32.mrb[17].mxu0  ;;  %v267_v6 = vmul.f32 %v3329_v4, %v3329_v4 }
 0x103   :  { %v3333_v7 = vpop.f32.mrb[18].mxu0 }
 0x104   :  { %300 = vadd.xlane.f32.xlu0 %v267_v6  ;;  %v2401_v8 = vpop.f32.mrb[19].mxu0  ;;  %v268_v9 = vmul.f32 %v3333_v7, %v3333_v7 }
 0x106   :  { %302 = vadd.xlane.f32.xlu1 %v268_v9 }
 0x109   :  { %v3344_v12 = vpop.f32.mrb[20].mxu0 }
 0x10a   :  { %v2404_v13 = vpop.f32.mrb[21].mxu0  ;;  %v269_v14 = vmul.f32 %v3344_v12, %v3344_v12 }
 0x10b   :  { %v3348_v15 = vpop.f32.mrb[22].mxu0 }
 0x10c   :  { %304 = vadd.xlane.f32.xlu0 %v269_v14  ;;  %v2405_v16 = vpop.f32.mrb[23].mxu0  ;;  %v270_v17 = vmul.f32 %v3348_v15, %v3348_v15 }
 0x10e   :  { %306 = vadd.xlane.f32.xlu1 %v270_v17 }
 0x111   :  { %v3360_v20 = vpop.f32.mrb[24].mxu0 }
 0x112   :  { %v2408_v21 = vpop.f32.mrb[25].mxu0  ;;  %v271_v22 = vmul.f32 %v3360_v20, %v3360_v20 }
 0x113   :  { %v3364_v23 = vpop.f32.mrb[26].mxu0 }
 0x114   :  { %308 = vadd.xlane.f32.xlu0 %v271_v22  ;;  %v2409_v24 = vpop.f32.mrb[27].mxu0  ;;  %v272_v25 = vmul.f32 %v3364_v23, %v3364_v23 }
 0x116   :  { %310 = vadd.xlane.f32.xlu1 %v272_v25 }
 0x119   :  { %v3376_v28 = vpop.f32.mrb[28].mxu0 }
 0x11a   :  { %v2412_v29 = vpop.f32.mrb[29].mxu0  ;;  %v273_v30 = vmul.f32 %v3376_v28, %v3376_v28 }
 0x11b   :  { %v3380_v31 = vpop.f32.mrb[30].mxu0 }
 0x11c   :  { %312 = vadd.xlane.f32.xlu0 %v273_v30  ;;  %v2413_v32 = vpop.f32.mrb[31].mxu0  ;;  %v274_v33 = vmul.f32 %v3380_v31, %v3380_v31 }
 0x11e   :  { %314 = vadd.xlane.f32.xlu1 %v274_v33 }
 0x121   :  { %v3392_v36 = vpop.f32.mrb[32].mxu0 }
 0x122   :  { %v2416_v37 = vpop.f32.mrb[33].mxu0  ;;  %v275_v38 = vmul.f32 %v3392_v36, %v3392_v36 }
 0x123   :  { %v3396_v39 = vpop.f32.mrb[34].mxu0 }
 0x124   :  { %316 = vadd.xlane.f32.xlu0 %v275_v38  ;;  %v2417_v40 = vpop.f32.mrb[35].mxu0  ;;  %v276_v41 = vmul.f32 %v3396_v39, %v3396_v39 }
 0x126   :  { %318 = vadd.xlane.f32.xlu1 %v276_v41 }
 0x129   :  { %v3401_v42 = vpop.f32.mrb[36].mxu0 }
 0x12a   :  { %v2420_v44 = vpop.f32.mrb[37].mxu0  ;;  %v277_v45 = vmul.f32 %v3401_v42, %v3401_v42 }
 0x12b   :  { %v3405_v47 = vpop.f32.mrb[38].mxu0 }
 0x12c   :  { %320 = vadd.xlane.f32.xlu0 %v277_v45  ;;  %v2421_v48 = vpop.f32.mrb[39].mxu0  ;;  %v278_v50 = vmul.f32 %v3405_v47, %v3405_v47 }
 0x12e   :  { %322 = vadd.xlane.f32.xlu1 %v278_v50 }
 0x131   :  { %v3409_v51 = vpop.f32.mrb[40].mxu0 }
 0x132   :  { %v2424_v53 = vpop.f32.mrb[41].mxu0  ;;  %v279_v54 = vmul.f32 %v3409_v51, %v3409_v51 }
 0x133   :  { %v3413_v56 = vpop.f32.mrb[42].mxu0 }
 0x134   :  { %324 = vadd.xlane.f32.xlu0 %v279_v54  ;;  %v2425_v57 = vpop.f32.mrb[43].mxu0  ;;  %v280_v59 = vmul.f32 %v3413_v56, %v3413_v56 }
 0x136   :  { %326 = vadd.xlane.f32.xlu1 %v280_v59 }
 0x139   :  { %v3417_v60 = vpop.f32.mrb[44].mxu0 }
 0x13a   :  { %v2428_v62 = vpop.f32.mrb[45].mxu0  ;;  %v281_v63 = vmul.f32 %v3417_v60, %v3417_v60 }
 0x13b   :  { %v3421_v2 = vpop.f32.mrb[46].mxu0 }
 0x13c   :  { %328 = vadd.xlane.f32.xlu0 %v281_v63  ;;  %v2429_v3 = vpop.f32.mrb[47].mxu0  ;;  %v282_v5 = vmul.f32 %v3421_v2, %v3421_v2 }
 0x13e   :  { %330 = vadd.xlane.f32.xlu1 %v282_v5 }
 0x141   :  { %v3425_v6 = vpop.f32.mrb[48].mxu0 }
 0x142   :  { %v283_v8 = vmul.f32 %v3425_v6, %v3425_v6  ;;  %v2432_v9 = vpop.f32.mrb[49].mxu0 }
 0x143   :  { %v256_v10 = vpop.f32.mrb[50].mxu0 }
 0x144   :  { %332 = vadd.xlane.f32.xlu0 %v283_v8  ;;  %v2433_v11 = vpop.f32.mrb[51].mxu0 }
 0x171   :  { %v285_v13 = vpop.xlane.xlu0 %284 }
 0x172   :  { %v335_v14 = vmul.f32 0.0078125, %v285_v13 }
 0x174   :  { %v360_v16 = vadd.f32 1e-05, %v335_v14 }
 0x175   :  { %v287_v17 = vpop.xlane.xlu0 %286 }
 0x176   :  { %2683 = vrsqrt.f32 %v360_v16  ;;  %v336_v18 = vmul.f32 0.0078125, %v287_v17 }
 0x178   :  { %v361_v19 = vadd.f32 1e-05, %v336_v18 }
 0x179   :  { %v289_v21 = vpop.xlane.xlu1 %288 }
 0x17a   :  { %2685 = vrsqrt.f32 %v361_v19  ;;  %v337_v22 = vmul.f32 0.0078125, %v289_v21 }
 0x17c   :  { %v362_v24 = vadd.f32 1e-05, %v337_v22 }
 0x17d   :  { %v291_v25 = vpop.xlane.xlu1 %290 }
 0x17e   :  { %2687 = vrsqrt.f32 %v362_v24  ;;  %v338_v26 = vmul.f32 0.0078125, %v291_v25 }
 0x180   :  { %v2684_v27 = vpop.eup %2683  ;;  %v363_v29 = vadd.f32 1e-05, %v338_v26 }
 0x181   :  { %v293_v30 = vpop.xlane.xlu0 %292  ;;  %v3430_v32 = vmul.f32 %v2684_v27, %v3297_v43 }
 0x182   :  { %2689 = vrsqrt.f32 %v363_v29  ;;  %v339_v33 = vmul.f32 0.0078125, %v293_v30 }
 0x183   :  { %v295_v34 = vpop.xlane.xlu1 %294  ;;  %v2198_v35 = vmul.f32 -1.442695, %v3430_v32 }
 0x184   :  { %v2686_v37 = vpop.eup %2685  ;;  %v364_v38 = vadd.f32 1e-05, %v339_v33  ;;  %v340_v40 = vmul.f32 0.0078125, %v295_v34 }
 0x185   :  { %v3434_v41 = vmul.f32 %v2686_v37, %v3301_v46  ;;  %2691 = vpow2.f32 %v2198_v35 }
 0x186   :  { %2693 = vrsqrt.f32 %v364_v38  ;;  %v365_v44 = vadd.f32 1e-05, %v340_v40 }
 0x187   :  { %v2199_v45 = vmul.f32 -1.442695, %v3434_v41 }
 0x188   :  { %v2688_v48 = vpop.eup %2687  ;;  %2695 = vrsqrt.f32 %v365_v44 }
 0x189   :  { %v297_v43 = vpop.xlane.xlu0 %296  ;;  %2697 = vpow2.f32 %v2199_v45  ;;  %v3438_v50 = vmul.f32 %v2688_v48, %v3305_v49 }
 0x18a   :  { %v341_v53 = vmul.f32 0.0078125, %v297_v43 }
 0x18b   :  { %v299_v54 = vpop.xlane.xlu1 %298  ;;  %v2200_v57 = vmul.f32 -1.442695, %v3438_v50 }
 0x18c   :  { %v2690_v59 = vpop.eup %2689  ;;  %v366_v62 = vadd.f32 1e-05, %v341_v53  ;;  %v342_v46 = vmul.f32 0.0078125, %v299_v54 }
 0x18d   :  { %v3442_v63 = vmul.f32 %v2690_v59, %v3309_v52  ;;  %2699 = vpow2.f32 %v2200_v57 }
 0x18e   :  { %2701 = vrsqrt.f32 %v366_v62  ;;  %v367_v3 = vadd.f32 1e-05, %v342_v46 }
 0x18f   :  { %v2692_v5 = vpop.eup %2691  ;;  %v2201_v8 = vmul.f32 -1.442695, %v3442_v63 }
 0x190   :  { %v2694_v9 = vpop.eup %2693  ;;  %2703 = vrsqrt.f32 %v367_v3  ;;  %v510_v49 = vadd.f32 1.0, %v2692_v5 }
 0x191   :  { %v301_v10 = vpop.xlane.xlu0 %300  ;;  %2705 = vpow2.f32 %v2201_v8  ;;  %v3446_v11 = vmul.f32 %v2694_v9, %v3313_v55 }
 0x192   :  { %v2696_v13 = vpop.eup %2695  ;;  %v343_v14 = vmul.f32 0.0078125, %v301_v10  ;;  %2707 = vrcp.f32 %v510_v49 }
 0x193   :  { %v2698_v16 = vpop.eup %2697  ;;  %v303_v17 = vpop.xlane.xlu1 %302  ;;  %v3449_v52 = vmul.f32 %v2696_v13, %v3317_v58  ;;  %v2202_v18 = vmul.f32 -1.442695, %v3446_v11 }
 0x194   :  { %v368_v19 = vadd.f32 1e-05, %v343_v14  ;;  %v344_v21 = vmul.f32 0.0078125, %v303_v17  ;;  %v511_v22 = vadd.f32 1.0, %v2698_v16 }
 0x195   :  { %2709 = vpow2.f32 %v2202_v18  ;;  %v2203_v24 = vmul.f32 -1.442695, %v3449_v52 }
 0x196   :  { %2711 = vrsqrt.f32 %v368_v19  ;;  %v369_v25 = vadd.f32 1e-05, %v344_v21 }
 0x197   :  { %v2700_v55 = vpop.eup %2699  ;;  %2713 = vrcp.f32 %v511_v22 }
 0x198   :  { %v2702_v26 = vpop.eup %2701  ;;  %2715 = vrsqrt.f32 %v369_v25  ;;  %v512_v27 = vadd.f32 1.0, %v2700_v55 }
 0x199   :  { %v305_v29 = vpop.xlane.xlu0 %304  ;;  %2717 = vpow2.f32 %v2203_v24  ;;  %v3454_v58 = vmul.f32 %v2702_v26, %v3321_v61 }
 0x19a   :  { %v2704_v30 = vpop.eup %2703  ;;  %v345_v33 = vmul.f32 0.0078125, %v305_v29  ;;  %2719 = vrcp.f32 %v512_v27 }
 0x19b   :  { %v2706_v34 = vpop.eup %2705  ;;  %v307_v35 = vpop.xlane.xlu1 %306  ;;  %v3457_v37 = vmul.f32 %v2704_v30, %v3325_v1  ;;  %v2204_v38 = vmul.f32 -1.442695, %v3454_v58 }
 0x19c   :  { %v370_v40 = vadd.f32 1e-05, %v345_v33  ;;  %v346_v44 = vmul.f32 0.0078125, %v307_v35  ;;  %v513_v45 = vadd.f32 1.0, %v2706_v34  ;;  %v2708_v43 = vpop.eup %2707 }
 0x19d   :  { %2721 = vpow2.f32 %v2204_v38  ;;  %v2205_v48 = vmul.f32 -1.442695, %v3457_v37  ;;  %v585_v5 = vmul.f32 %v2708_v43, %v3430_v32 }
 0x19e   :  { %2723 = vrsqrt.f32 %v370_v40  ;;  %v371_v61 = vadd.f32 1e-05, %v346_v44 }
 0x19f   :  { %v2710_v53 = vpop.eup %2709  ;;  %2725 = vrcp.f32 %v513_v45 }
 0x1a0   :  { %v2712_v54 = vpop.eup %2711  ;;  %2727 = vrsqrt.f32 %v371_v61  ;;  %v514_v57 = vadd.f32 1.0, %v2710_v53 }
 0x1a1   :  { %v2714_v59 = vpop.eup %2713  ;;  %v309_v1 = vpop.xlane.xlu0 %308  ;;  %2729 = vpow2.f32 %v2205_v48  ;;  %v3462_v62 = vmul.f32 %v2712_v54, %v3329_v4 }
 0x1a2   :  { %v2716_v46 = vpop.eup %2715  ;;  %v347_v3 = vmul.f32 0.0078125, %v309_v1  ;;  %v586_v8 = vmul.f32 %v2714_v59, %v3434_v41  ;;  %2731 = vrcp.f32 %v514_v57 }
 0x1a3   :  { %v2718_v9 = vpop.eup %2717  ;;  %v311_v49 = vpop.xlane.xlu1 %310  ;;  %v3467_v10 = vmul.f32 %v2716_v46, %v3333_v7  ;;  %v2206_v13 = vmul.f32 -1.442695, %v3462_v62 }
 0x1a4   :  { %v372_v14 = vadd.f32 1e-05, %v347_v3  ;;  %v348_v16 = vmul.f32 0.0078125, %v311_v49  ;;  %v610_v17 = vpack.c.bf16 %v586_v8, %v585_v5  ;;  %v515_v18 = vadd.f32 1.0, %v2718_v9  ;;  %v2720_v19 = vpop.eup %2719 }
 0x1a5   :  { %2733 = vpow2.f32 %v2206_v13  ;;  %v2207_v4 = vmul.f32 -1.442695, %v3467_v10  ;;  %v587_v27 = vmul.f32 %v2720_v19, %v3438_v50 }
 0x1a6   :  { %2735 = vrsqrt.f32 %v372_v14  ;;  %v373_v32 = vadd.f32 1e-05, %v348_v16  ;;  %2451 = vmatmul.mubr.bf16.vlgmr.msra.gmra.mrb[0].mxu1 %v610_v17 }
 0x1a7   :  { %v2722_v41 = vpop.eup %2721  ;;  %2454 = vmatprep.mubr.msk.bf16.mxu1 %vm3134_vm0, %v3133_v0  ;;  %2737 = vrcp.f32 %v515_v18 }
 0x1a8   :  { %v2724_v7 = vpop.eup %2723  ;;  %2739 = vrsqrt.f32 %v373_v32  ;;  %v516_v21 = vadd.f32 1.0, %v2722_v41 }
 0x1a9   :  { %v2726_v22 = vpop.eup %2725  ;;  %v313_v24 = vpop.xlane.xlu0 %312  ;;  %2741 = vpow2.f32 %v2207_v4  ;;  %v3474_v25 = vmul.f32 %v2724_v7, %v3344_v12 }
 0x1aa   :  { %v2728_v55 = vpop.eup %2727  ;;  %v349_v26 = vmul.f32 0.0078125, %v313_v24  ;;  %v588_v29 = vmul.f32 %v2726_v22, %v3442_v63  ;;  %2743 = vrcp.f32 %v516_v21 }
 0x1ab   :  { %v2730_v30 = vpop.eup %2729  ;;  %v315_v33 = vpop.xlane.xlu1 %314  ;;  %v3479_v34 = vmul.f32 %v2728_v55, %v3348_v15  ;;  %v2208_v35 = vmul.f32 -1.442695, %v3474_v25 }
 0x1ac   :  { %v374_v38 = vadd.f32 1e-05, %v349_v26  ;;  %v350_v40 = vmul.f32 0.0078125, %v315_v33  ;;  %v611_v44 = vpack.c.bf16 %v588_v29, %v587_v27  ;;  %v517_v45 = vadd.f32 1.0, %v2730_v30  ;;  %v2732_v12 = vpop.eup %2731 }
 0x1ad   :  { %2745 = vpow2.f32 %v2208_v35  ;;  %v2209_v48 = vmul.f32 -1.442695, %v3479_v34  ;;  %v589_v1 = vmul.f32 %v2732_v12, %v3446_v11 }
 0x1ae   :  { %2747 = vrsqrt.f32 %v374_v38  ;;  %v375_v50 = vadd.f32 1e-05, %v350_v40  ;;  %2455 = vmatmul.mubr.bf16.gmra.mrb[4].mxu1 %v611_v44 }
 0x1af   :  { %v2734_v63 = vpop.eup %2733  ;;  %2458 = vmatprep.mubr.msk.bf16.mxu1 %vm3134_vm0, %v3133_v0  ;;  %2749 = vrcp.f32 %v517_v45 }
 0x1b0   :  { %v2736_v15 = vpop.eup %2735  ;;  %2751 = vrsqrt.f32 %v375_v50  ;;  %v518_v43 = vadd.f32 1.0, %v2734_v63 }
 0x1b1   :  { %v2738_v61 = vpop.eup %2737  ;;  %v317_v53 = vpop.xlane.xlu0 %316  ;;  %2753 = vpow2.f32 %v2209_v48  ;;  %v3486_v54 = vmul.f32 %v2736_v15, %v3360_v20 }
 0x1b2   :  { %v2740_v57 = vpop.eup %2739  ;;  %v351_v59 = vmul.f32 0.0078125, %v317_v53  ;;  %v590_v46 = vmul.f32 %v2738_v61, %v3449_v52  ;;  %2755 = vrcp.f32 %v518_v43 }
 0x1b3   :  { %v2742_v3 = vpop.eup %2741  ;;  %v319_v5 = vpop.xlane.xlu1 %318  ;;  %v3491_v8 = vmul.f32 %v2740_v57, %v3364_v23  ;;  %v2210_v9 = vmul.f32 -1.442695, %v3486_v54 }
 0x1b4   :  { %v376_v49 = vadd.f32 1e-05, %v351_v59  ;;  %v352_v13 = vmul.f32 0.0078125, %v319_v5  ;;  %v612_v14 = vpack.c.bf16 %v590_v46, %v589_v1  ;;  %v519_v16 = vadd.f32 1.0, %v2742_v3  ;;  %v2744_v20 = vpop.eup %2743 }
 0x1b5   :  { %2757 = vpow2.f32 %v2210_v9  ;;  %v2211_v17 = vmul.f32 -1.442695, %v3491_v8  ;;  %v591_v21 = vmul.f32 %v2744_v20, %v3454_v58 }
 0x1b6   :  { %2759 = vrsqrt.f32 %v376_v49  ;;  %v377_v11 = vadd.f32 1e-05, %v352_v13  ;;  %2459 = vmatmul.mubr.bf16.gmra.mrb[8].mxu1 %v612_v14 }
 0x1b7   :  { %v2746_v52 = vpop.eup %2745  ;;  %2462 = vmatprep.mubr.msk.bf16.mxu1 %vm3134_vm0, %v3133_v0  ;;  %2761 = vrcp.f32 %v519_v16 }
 0x1b8   :  { %v2748_v23 = vpop.eup %2747  ;;  %2763 = vrsqrt.f32 %v377_v11  ;;  %v520_v18 = vadd.f32 1.0, %v2746_v52 }
 0x1b9   :  { %v2750_v4 = vpop.eup %2749  ;;  %v321_v19 = vpop.xlane.xlu0 %320  ;;  %2765 = vpow2.f32 %v2211_v17  ;;  %v3498_v32 = vmul.f32 %v2748_v23, %v3376_v28 }
 0x1ba   :  { %v2752_v41 = vpop.eup %2751  ;;  %v353_v7 = vmul.f32 0.0078125, %v321_v19  ;;  %v592_v22 = vmul.f32 %v2750_v4, %v3457_v37  ;;  %2767 = vrcp.f32 %v520_v18 }
 0x1bb   :  { %v2754_v24 = vpop.eup %2753  ;;  %v323_v55 = vpop.xlane.xlu1 %322  ;;  %v3503_v26 = vmul.f32 %v2752_v41, %v3380_v31  ;;  %v2212_v27 = vmul.f32 -1.442695, %v3498_v32 }
 0x1bc   :  { %v378_v29 = vadd.f32 1e-05, %v353_v7  ;;  %v354_v30 = vmul.f32 0.0078125, %v323_v55  ;;  %v613_v33 = vpack.c.bf16 %v592_v22, %v591_v21  ;;  %v521_v35 = vadd.f32 1.0, %v2754_v24  ;;  %v2756_v28 = vpop.eup %2755 }
 0x1bd   :  { %2769 = vpow2.f32 %v2212_v27  ;;  %v2213_v38 = vmul.f32 -1.442695, %v3503_v26  ;;  %v593_v63 = vmul.f32 %v2756_v28, %v3462_v62 }
 0x1be   :  { %2771 = vrsqrt.f32 %v378_v29  ;;  %v379_v58 = vadd.f32 1e-05, %v354_v30  ;;  %2463 = vmatmul.mubr.bf16.gmra.mrb[12].mxu1 %v613_v33 }
 0x1bf   :  { %v2758_v37 = vpop.eup %2757  ;;  %2466 = vmatprep.mubr.msk.bf16.mxu1 %vm3134_vm0, %v3133_v0  ;;  %2773 = vrcp.f32 %v521_v35 }
 0x1c0   :  { %v2760_v31 = vpop.eup %2759  ;;  %2775 = vrsqrt.f32 %v379_v58  ;;  %v522_v40 = vadd.f32 1.0, %v2758_v37 }
 0x1c1   :  { %v2762_v44 = vpop.eup %2761  ;;  %v325_v45 = vpop.xlane.xlu0 %324  ;;  %2777 = vpow2.f32 %v2213_v38  ;;  %v3510_v12 = vmul.f32 %v2760_v31, %v3392_v36 }
 0x1c2   :  { %v2764_v48 = vpop.eup %2763  ;;  %v355_v50 = vmul.f32 0.0078125, %v325_v45  ;;  %v594_v15 = vmul.f32 %v2762_v44, %v3467_v10  ;;  %2779 = vrcp.f32 %v522_v40 }
 0x1c3   :  { %v2766_v43 = vpop.eup %2765  ;;  %v327_v61 = vpop.xlane.xlu1 %326  ;;  %v3515_v53 = vmul.f32 %v2764_v48, %v3396_v39  ;;  %v2214_v57 = vmul.f32 -1.442695, %v3510_v12 }
 0x1c4   :  { %v380_v59 = vadd.f32 1e-05, %v355_v50  ;;  %v356_v1 = vmul.f32 0.0078125, %v327_v61  ;;  %v614_v46 = vpack.c.bf16 %v594_v15, %v593_v63  ;;  %v523_v3 = vadd.f32 1.0, %v2766_v43  ;;  %v2768_v36 = vpop.eup %2767 }
 0x1c5   :  { %2781 = vpow2.f32 %v2214_v57  ;;  %v2215_v5 = vmul.f32 -1.442695, %v3515_v53  ;;  %v595_v17 = vmul.f32 %v2768_v36, %v3474_v25 }
 0x1c6   :  { %2783 = vrsqrt.f32 %v380_v59  ;;  %v381_v62 = vadd.f32 1e-05, %v356_v1  ;;  %2467 = vmatmul.mubr.bf16.gmra.mrb[16].mxu1 %v614_v46 }
 0x1c7   :  { %v2770_v10 = vpop.eup %2769  ;;  %2470 = vmatprep.mubr.msk.bf16.mxu1 %vm3134_vm0, %v3133_v0  ;;  %2785 = vrcp.f32 %v523_v3 }
 0x1c8   :  { %v2772_v39 = vpop.eup %2771  ;;  %2787 = vrsqrt.f32 %v381_v62  ;;  %v524_v9 = vadd.f32 1.0, %v2770_v10 }
 0x1c9   :  { %v2774_v49 = vpop.eup %2773  ;;  %v329_v13 = vpop.xlane.xlu0 %328  ;;  %2789 = vpow2.f32 %v2215_v5  ;;  %v3522_v14 = vmul.f32 %v2772_v39, %v3401_v42 }
 0x1ca   :  { %v2776_v16 = vpop.eup %2775  ;;  %v357_v20 = vmul.f32 0.0078125, %v329_v13  ;;  %v596_v11 = vmul.f32 %v2774_v49, %v3479_v34  ;;  %2791 = vrcp.f32 %v524_v9 }
 0x1cb   :  { %v2778_v52 = vpop.eup %2777  ;;  %v331_v23 = vpop.xlane.xlu1 %330  ;;  %v3527_v18 = vmul.f32 %v2776_v16, %v3405_v47  ;;  %v2216_v4 = vmul.f32 -1.442695, %v3522_v14 }
 0x1cc   :  { %v382_v19 = vadd.f32 1e-05, %v357_v20  ;;  %v358_v41 = vmul.f32 0.0078125, %v331_v23  ;;  %v615_v7 = vpack.c.bf16 %v596_v11, %v595_v17  ;;  %v525_v21 = vadd.f32 1.0, %v2778_v52  ;;  %v2780_v42 = vpop.eup %2779 }
 0x1cd   :  { %2793 = vpow2.f32 %v2216_v4  ;;  %v2217_v22 = vmul.f32 -1.442695, %v3527_v18  ;;  %v597_v35 = vmul.f32 %v2780_v42, %v3486_v54 }
 0x1ce   :  { %2795 = vrsqrt.f32 %v382_v19  ;;  %v383_v25 = vadd.f32 1e-05, %v358_v41  ;;  %2471 = vmatmul.mubr.bf16.gmra.mrb[20].mxu1 %v615_v7 }
 0x1cf   :  { %v2782_v34 = vpop.eup %2781  ;;  %2474 = vmatprep.mubr.msk.bf16.mxu1 %vm3134_vm0, %v3133_v0  ;;  %2797 = vrcp.f32 %v525_v21 }
 0x1d0   :  { %v2784_v47 = vpop.eup %2783  ;;  %2799 = vrsqrt.f32 %v383_v25  ;;  %v526_v24 = vadd.f32 1.0, %v2782_v34 }
 0x1d1   :  { %v2786_v55 = vpop.eup %2785  ;;  %v333_v27 = vpop.xlane.xlu0 %332  ;;  %2801 = vpow2.f32 %v2217_v22  ;;  %v3534_v29 = vmul.f32 %v2784_v47, %v3409_v51 }
 0x1d2   :  { %v2788_v30 = vpop.eup %2787  ;;  %v359_v33 = vmul.f32 0.0078125, %v333_v27  ;;  %v598_v28 = vmul.f32 %v2786_v55, %v3491_v8  ;;  %2803 = vrcp.f32 %v526_v24 }
 0x1d3   :  { %v2790_v38 = vpop.eup %2789  ;;  %v3539_v58 = vmul.f32 %v2788_v30, %v3413_v56  ;;  %v2218_v37 = vmul.f32 -1.442695, %v3534_v29  ;;  %v2668_v30 = vld [vmem:[%s4580_s3 + $0x8] sm:$0xff]  }
 0x1d4   :  { %v384_v31 = vadd.f32 1e-05, %v359_v33  ;;  %v616_v40 = vpack.c.bf16 %v598_v28, %v597_v35  ;;  %v527_v44 = vadd.f32 1.0, %v2790_v38  ;;  %v2792_v45 = vpop.eup %2791  ;;  %v2669_v33 = vld [vmem:[%s4580_s3 + $0x10] sm:$0xff]   ;;  %v2670_v35 = vld [vmem:[%s4580_s3 + $0x18] sm:$0xff]   ;;  %v2671_v28 = vld [vmem:[%s4580_s3 + $0x20] sm:$0xff]  }
 0x1d5   :  { %2805 = vpow2.f32 %v2218_v37  ;;  %v2219_v51 = vmul.f32 -1.442695, %v3539_v58  ;;  %v599_v15 = vmul.f32 %v2792_v45, %v3498_v32 }
 0x1d6   :  { %2807 = vrsqrt.f32 %v384_v31  ;;  %2475 = vmatmul.mubr.bf16.gmra.mrb[24].mxu1 %v616_v40 }
 0x1d7   :  { %v2794_v48 = vpop.eup %2793  ;;  %2478 = vmatprep.mubr.msk.bf16.mxu1 %vm3134_vm0, %v3133_v0  ;;  %2809 = vrcp.f32 %v527_v44 }
 0x1d8   :  { %v2796_v54 = vpop.eup %2795  ;;  %v528_v56 = vadd.f32 1.0, %v2794_v48  ;;  %2811 = vpow2.f32 %v2219_v51 }
 0x1d9   :  { %v2798_v8 = vpop.eup %2797  ;;  %v432_v50 = vmul.f32 %v2796_v54, %v3417_v60 }
 0x1da   :  { %v2800_v63 = vpop.eup %2799  ;;  %v600_v43 = vmul.f32 %v2798_v8, %v3503_v26  ;;  %2813 = vrcp.f32 %v528_v56 }
 0x1db   :  { %v2802_v61 = vpop.eup %2801  ;;  %v433_v57 = vmul.f32 %v2800_v63, %v3421_v2  ;;  %v2220_v59 = vmul.f32 -1.442695, %v432_v50 }
 0x1dc   :  { %v617_v1 = vpack.c.bf16 %v600_v43, %v599_v15  ;;  %v529_v46 = vadd.f32 1.0, %v2802_v61  ;;  %v2804_v36 = vpop.eup %2803 }
 0x1dd   :  { %2815 = vpow2.f32 %v2220_v59  ;;  %v2221_v3 = vmul.f32 -1.442695, %v433_v57  ;;  %v601_v10 = vmul.f32 %v2804_v36, %v3510_v12 }
 0x1de   :  { %2479 = vmatmul.mubr.bf16.gmra.mrb[28].mxu1 %v617_v1  ;;  %2817 = vrcp.f32 %v529_v46 }
 0x1df   :  { %v2806_v5 = vpop.eup %2805  ;;  %2482 = vmatprep.mubr.msk.bf16.mxu1 %vm3134_vm0, %v3133_v0  ;;  %2819 = vpow2.f32 %v2221_v3 }
 0x1e0   :  { %v2808_v60 = vpop.eup %2807  ;;  %v530_v32 = vadd.f32 1.0, %v2806_v5 }
 0x1e1   :  { %v2810_v26 = vpop.eup %2809  ;;  %v434_v62 = vmul.f32 %v2808_v60, %v3425_v6 }
 0x1e2   :  { %v2812_v2 = vpop.eup %2811  ;;  %v602_v39 = vmul.f32 %v2810_v26, %v3515_v53  ;;  %2821 = vrcp.f32 %v530_v32 }
 0x1e3   :  { %v531_v9 = vadd.f32 1.0, %v2812_v2  ;;  %v2222_v49 = vmul.f32 -1.442695, %v434_v62 }
 0x1e4   :  { %v618_v13 = vpack.c.bf16 %v602_v39, %v601_v10  ;;  %v2814_v16 = vpop.eup %2813 }
 0x1e5   :  { %2823 = vrcp.f32 %v531_v9  ;;  %v603_v52 = vmul.f32 %v2814_v16, %v3522_v14 }
 0x1e6   :  { %2483 = vmatmul.mubr.bf16.gmra.mrb[32].mxu1 %v618_v13  ;;  %2825 = vpow2.f32 %v2222_v49 }
 0x1e7   :  { %v2816_v20 = vpop.eup %2815  ;;  %2486 = vmatprep.mubr.msk.bf16.mxu1 %vm3134_vm0, %v3133_v0 }
 0x1e8   :  { %v2818_v17 = vpop.eup %2817  ;;  %v532_v11 = vadd.f32 1.0, %v2816_v20 }
 0x1e9   :  { %v2820_v6 = vpop.eup %2819  ;;  %v604_v12 = vmul.f32 %v2818_v17, %v3527_v18 }
 0x1ea   :  { %v533_v53 = vadd.f32 1.0, %v2820_v6  ;;  %2827 = vrcp.f32 %v532_v11 }
 0x1eb   :  { %v619_v23 = vpack.c.bf16 %v604_v12, %v603_v52 }
 0x1ec   :  { %2829 = vrcp.f32 %v533_v53  ;;  %v2822_v4 = vpop.eup %2821 }
 0x1ed   :  { %v605_v7 = vmul.f32 %v2822_v4, %v3534_v29  ;;  %v2667_v29 = vld [vmem:[%s4580_s3] sm:$0xff]   ;;  %v2673_v4 = vld [vmem:[%s4580_s3 + $0x30] sm:$0xff]  }
 0x1ee   :  { %2487 = vmatmul.mubr.bf16.gmra.mrb[36].mxu1 %v619_v23  ;;  %2503 = vmatpush3.bf16.msra.mxu0 %v2667_v29  ;;  %v2672_v23 = vld [vmem:[%s4580_s3 + $0x28] sm:$0xff]  }
 0x1ef   :  { %v2824_v19 = vpop.eup %2823  ;;  %2490 = vmatprep.mubr.msk.bf16.mxu1 %vm3134_vm0, %v3133_v0  ;;  %2504 = vmatprep.subr.bf16.mxu0 %v3133_v0 }
 0x1f0   :  { %v2826_v41 = vpop.eup %2825  ;;  %v606_v21 = vmul.f32 %v2824_v19, %v3539_v58 }
 0x1f1   :  { %v534_v42 = vadd.f32 1.0, %v2826_v41 }
 0x1f2   :  { %v620_v22 = vpack.c.bf16 %v606_v21, %v605_v7  ;;  %2505 = vmatpush3.bf16.msra.mxu0 %v2668_v30  ;;  %v2674_v21 = vld [vmem:[%s4580_s3 + $0x38] sm:$0xff]  }
 0x1f3   :  { %2831 = vrcp.f32 %v534_v42  ;;  %2506 = vmatprep.subr.bf16.mxu0 %v3133_v0 }
 0x1f4   :  { %v2828_v14 = vpop.eup %2827 }
 0x1f5   :  { %v607_v25 = vmul.f32 %v2828_v14, %v432_v50 }
 0x1f6   :  { %v2830_v18 = vpop.eup %2829  ;;  %2491 = vmatmul.mubr.bf16.gmra.mrb[40].mxu1 %v620_v22  ;;  %2507 = vmatpush3.bf16.msra.mxu0 %v2669_v33 }
 0x1f7   :  { %2494 = vmatprep.mubr.msk.bf16.mxu1 %vm3134_vm0, %v3133_v0  ;;  %v608_v34 = vmul.f32 %v2830_v18, %v433_v57  ;;  %2508 = vmatprep.subr.bf16.mxu0 %v3133_v0 }
 0x1f9   :  { %v621_v47 = vpack.c.bf16 %v608_v34, %v607_v25 }
 0x1fa   :  { %2509 = vmatpush3.bf16.msra.mxu0 %v2670_v35 }
 0x1fb   :  { %2510 = vmatprep.subr.bf16.mxu0 %v3133_v0 }
 0x1fd   :  { %v2832_v24 = vpop.eup %2831 }
 0x1fe   :  { %2495 = vmatmul.mubr.bf16.gmra.mrb[44].mxu1 %v621_v47  ;;  %v609_v55 = vmul.f32 %v2832_v24, %v434_v62  ;;  %2511 = vmatpush3.bf16.msra.mxu0 %v2671_v28 }
 0x1ff   :  { %2498 = vmatprep.mubr.msk.bf16.mxu1 %vm3134_vm0, %v3133_v0  ;;  %2512 = vmatprep.subr.bf16.mxu0 %v3133_v0 }
 0x200   :  { %v622_v27 = vpack.c.bf16 %v609_v55, %v609_v55 }
 0x202   :  { %2513 = vmatpush3.bf16.msra.mxu0 %v2672_v23 }
 0x203   :  { %2514 = vmatprep.subr.bf16.mxu0 %v3133_v0 }
 0x206   :  { %2499 = vmatmul.mubr.bf16.gmra.mrb[48].mxu1 %v622_v27  ;;  %2515 = vmatpush3.bf16.msra.mxu0 %v2673_v4 }
 0x207   :  { %2590 = vmatprep.mubr.msk.bf16.mxu1 %vm3134_vm0, %v3133_v0  ;;  %2516 = vmatprep.subr.bf16.mxu0 %v3133_v0 }
 0x20a   :  { %2517 = vmatpush3.bf16.msra.mxu0 %v2674_v21 }
 0x20b   :  { %2570 = vmatprep.subr.bf16.mxu0 %v3133_v0 }
 0x279   :  { %v3588_v38 = vpop.f32.mrb[0].mxu1 }
 0x27a   :  { %v2452_v58 = vpop.f32.mrb[1].mxu1  ;;  %v823_v37 = vmul.f32 %v3588_v38, %v3588_v38 }
 0x27b   :  { %v3592_v31 = vpop.f32.mrb[2].mxu1 }
 0x27c   :  { %v2453_v40 = vpop.f32.mrb[3].mxu1  ;;  %848 = vadd.xlane.f32.xlu1 %v823_v37  ;;  %v824_v44 = vmul.f32 %v3592_v31, %v3592_v31 }
 0x27e   :  { %850 = vadd.xlane.f32.xlu0 %v824_v44 }
 0x281   :  { %v3596_v45 = vpop.f32.mrb[4].mxu1 }
 0x282   :  { %v2456_v51 = vpop.f32.mrb[5].mxu1  ;;  %v825_v48 = vmul.f32 %v3596_v45, %v3596_v45 }
 0x283   :  { %v3600_v54 = vpop.f32.mrb[6].mxu1 }
 0x284   :  { %v2457_v56 = vpop.f32.mrb[7].mxu1  ;;  %852 = vadd.xlane.f32.xlu1 %v825_v48  ;;  %v826_v8 = vmul.f32 %v3600_v54, %v3600_v54 }
 0x286   :  { %854 = vadd.xlane.f32.xlu0 %v826_v8 }
 0x289   :  { %v3604_v50 = vpop.f32.mrb[8].mxu1 }
 0x28a   :  { %v2460_v63 = vpop.f32.mrb[9].mxu1  ;;  %v827_v15 = vmul.f32 %v3604_v50, %v3604_v50 }
 0x28b   :  { %v3608_v43 = vpop.f32.mrb[10].mxu1 }
 0x28c   :  { %v2461_v61 = vpop.f32.mrb[11].mxu1  ;;  %856 = vadd.xlane.f32.xlu1 %v827_v15  ;;  %v828_v57 = vmul.f32 %v3608_v43, %v3608_v43 }
 0x28e   :  { %858 = vadd.xlane.f32.xlu0 %v828_v57 }
 0x291   :  { %v3612_v59 = vpop.f32.mrb[12].mxu1 }
 0x292   :  { %v2464_v1 = vpop.f32.mrb[13].mxu1  ;;  %v829_v46 = vmul.f32 %v3612_v59, %v3612_v59 }
 0x293   :  { %v3616_v3 = vpop.f32.mrb[14].mxu1 }
 0x294   :  { %v2465_v36 = vpop.f32.mrb[15].mxu1  ;;  %860 = vadd.xlane.f32.xlu1 %v829_v46  ;;  %v830_v5 = vmul.f32 %v3616_v3, %v3616_v3 }
 0x296   :  { %862 = vadd.xlane.f32.xlu0 %v830_v5 }
 0x299   :  { %v3620_v60 = vpop.f32.mrb[16].mxu1 }
 0x29a   :  { %v2468_v32 = vpop.f32.mrb[17].mxu1  ;;  %v831_v26 = vmul.f32 %v3620_v60, %v3620_v60 }
 0x29b   :  { %v3624_v62 = vpop.f32.mrb[18].mxu1 }
 0x29c   :  { %v2469_v2 = vpop.f32.mrb[19].mxu1  ;;  %864 = vadd.xlane.f32.xlu1 %v831_v26  ;;  %v832_v10 = vmul.f32 %v3624_v62, %v3624_v62 }
 0x29e   :  { %866 = vadd.xlane.f32.xlu0 %v832_v10 }
 0x2a1   :  { %v3628_v39 = vpop.f32.mrb[20].mxu1 }
 0x2a2   :  { %v2472_v9 = vpop.f32.mrb[21].mxu1  ;;  %v833_v49 = vmul.f32 %v3628_v39, %v3628_v39 }
 0x2a3   :  { %v3632_v13 = vpop.f32.mrb[22].mxu1 }
 0x2a4   :  { %v2473_v16 = vpop.f32.mrb[23].mxu1  ;;  %868 = vadd.xlane.f32.xlu1 %v833_v49  ;;  %v834_v20 = vmul.f32 %v3632_v13, %v3632_v13 }
 0x2a6   :  { %870 = vadd.xlane.f32.xlu0 %v834_v20 }
 0x2a9   :  { %v3636_v17 = vpop.f32.mrb[24].mxu1 }
 0x2aa   :  { %v2476_v11 = vpop.f32.mrb[25].mxu1  ;;  %v835_v6 = vmul.f32 %v3636_v17, %v3636_v17 }
 0x2ab   :  { %v3640_v52 = vpop.f32.mrb[26].mxu1 }
 0x2ac   :  { %v2477_v12 = vpop.f32.mrb[27].mxu1  ;;  %872 = vadd.xlane.f32.xlu1 %v835_v6  ;;  %v836_v53 = vmul.f32 %v3640_v52, %v3640_v52 }
 0x2ae   :  { %874 = vadd.xlane.f32.xlu0 %v836_v53 }
 0x2b1   :  { %v3651_v19 = vpop.f32.mrb[28].mxu1 }
 0x2b2   :  { %v2480_v41 = vpop.f32.mrb[29].mxu1  ;;  %v837_v7 = vmul.f32 %v3651_v19, %v3651_v19 }
 0x2b3   :  { %v3658_v42 = vpop.f32.mrb[30].mxu1 }
 0x2b4   :  { %v2481_v22 = vpop.f32.mrb[31].mxu1  ;;  %876 = vadd.xlane.f32.xlu1 %v837_v7  ;;  %v838_v14 = vmul.f32 %v3658_v42, %v3658_v42 }
 0x2b6   :  { %878 = vadd.xlane.f32.xlu0 %v838_v14 }
 0x2b9   :  { %v3664_v18 = vpop.f32.mrb[32].mxu1 }
 0x2ba   :  { %v2484_v25 = vpop.f32.mrb[33].mxu1  ;;  %v839_v34 = vmul.f32 %v3664_v18, %v3664_v18 }
 0x2bb   :  { %v3668_v47 = vpop.f32.mrb[34].mxu1 }
 0x2bc   :  { %v2485_v24 = vpop.f32.mrb[35].mxu1  ;;  %880 = vadd.xlane.f32.xlu1 %v839_v34  ;;  %v840_v55 = vmul.f32 %v3668_v47, %v3668_v47 }
 0x2be   :  { %882 = vadd.xlane.f32.xlu0 %v840_v55 }
 0x2c1   :  { %v3672_v27 = vpop.f32.mrb[36].mxu1 }
 0x2c2   :  { %v2488_v29 = vpop.f32.mrb[37].mxu1  ;;  %v841_v30 = vmul.f32 %v3672_v27, %v3672_v27 }
 0x2c3   :  { %v3676_v33 = vpop.f32.mrb[38].mxu1 }
 0x2c4   :  { %v2489_v35 = vpop.f32.mrb[39].mxu1  ;;  %884 = vadd.xlane.f32.xlu1 %v841_v30  ;;  %v842_v28 = vmul.f32 %v3676_v33, %v3676_v33 }
 0x2c6   :  { %886 = vadd.xlane.f32.xlu0 %v842_v28 }
 0x2c9   :  { %v3680_v58 = vpop.f32.mrb[40].mxu1 }
 0x2ca   :  { %v2492_v37 = vpop.f32.mrb[41].mxu1  ;;  %v843_v40 = vmul.f32 %v3680_v58, %v3680_v58 }
 0x2cb   :  { %v3684_v44 = vpop.f32.mrb[42].mxu1 }
 0x2cc   :  { %v2493_v51 = vpop.f32.mrb[43].mxu1  ;;  %888 = vadd.xlane.f32.xlu1 %v843_v40  ;;  %v844_v48 = vmul.f32 %v3684_v44, %v3684_v44 }
 0x2ce   :  { %890 = vadd.xlane.f32.xlu0 %v844_v48 }
 0x2d1   :  { %v3688_v56 = vpop.f32.mrb[44].mxu1 }
 0x2d2   :  { %v2496_v8 = vpop.f32.mrb[45].mxu1  ;;  %v845_v63 = vmul.f32 %v3688_v56, %v3688_v56 }
 0x2d3   :  { %v3692_v15 = vpop.f32.mrb[46].mxu1 }
 0x2d4   :  { %892 = vadd.xlane.f32.xlu1 %v845_v63  ;;  %v2497_v61 = vpop.f32.mrb[47].mxu1  ;;  %v846_v57 = vmul.f32 %v3692_v15, %v3692_v15 }
 0x2d6   :  { %894 = vadd.xlane.f32.xlu0 %v846_v57 }
 0x2d9   :  { %v3696_v1 = vpop.f32.mrb[48].mxu1 }
 0x2da   :  { %v2500_v46 = vpop.f32.mrb[49].mxu1  ;;  %v847_v36 = vmul.f32 %v3696_v1, %v3696_v1 }
 0x2db   :  { %v820_v5 = vpop.f32.mrb[50].mxu1 }
 0x2dc   :  { %896 = vadd.xlane.f32.xlu1 %v847_v36  ;;  %v2501_v32 = vpop.f32.mrb[51].mxu1 }
 0x309   :  { %v849_v26 = vpop.xlane.xlu1 %848 }
 0x30a   :  { %v898_v2 = vmul.f32 0.0078125, %v849_v26 }
 0x30b   :  { %v851_v10 = vpop.xlane.xlu0 %850 }
 0x30c   :  { %v923_v9 = vadd.f32 1e-05, %v898_v2  ;;  %v899_v49 = vmul.f32 0.0078125, %v851_v10 }
 0x30e   :  { %2833 = vrsqrt.f32 %v923_v9  ;;  %v924_v16 = vadd.f32 1e-05, %v899_v49 }
 0x310   :  { %2835 = vrsqrt.f32 %v924_v16 }
 0x311   :  { %v853_v20 = vpop.xlane.xlu1 %852 }
 0x312   :  { %v900_v11 = vmul.f32 0.0078125, %v853_v20 }
 0x313   :  { %v855_v6 = vpop.xlane.xlu0 %854 }
 0x314   :  { %v925_v12 = vadd.f32 1e-05, %v900_v11  ;;  %v901_v53 = vmul.f32 0.0078125, %v855_v6 }
 0x316   :  { %2837 = vrsqrt.f32 %v925_v12  ;;  %v926_v23 = vadd.f32 1e-05, %v901_v53 }
 0x318   :  { %v2834_v4 = vpop.eup %2833  ;;  %2839 = vrsqrt.f32 %v926_v23 }
 0x319   :  { %v3701_v41 = vmul.f32 %v2834_v4, %v3588_v38  ;;  %v857_v7 = vpop.xlane.xlu1 %856 }
 0x31a   :  { %v2836_v21 = vpop.eup %2835  ;;  %v902_v22 = vmul.f32 0.0078125, %v857_v7 }
 0x31b   :  { %v2231_v14 = vmul.f32 -1.442695, %v3701_v41  ;;  %v3705_v25 = vmul.f32 %v2836_v21, %v3592_v31  ;;  %v859_v34 = vpop.xlane.xlu0 %858 }
 0x31c   :  { %v927_v24 = vadd.f32 1e-05, %v902_v22  ;;  %v903_v55 = vmul.f32 0.0078125, %v859_v34 }
 0x31d   :  { %2841 = vpow2.f32 %v2231_v14  ;;  %v2232_v29 = vmul.f32 -1.442695, %v3705_v25 }
 0x31e   :  { %2843 = vrsqrt.f32 %v927_v24  ;;  %v928_v30 = vadd.f32 1e-05, %v903_v55 }
 0x31f   :  { %2845 = vpow2.f32 %v2232_v29 }
 0x320   :  { %v2838_v35 = vpop.eup %2837  ;;  %2847 = vrsqrt.f32 %v928_v30 }
 0x321   :  { %v861_v38 = vpop.xlane.xlu1 %860  ;;  %v3709_v28 = vmul.f32 %v2838_v35, %v3596_v45 }
 0x322   :  { %v2840_v37 = vpop.eup %2839  ;;  %v904_v40 = vmul.f32 0.0078125, %v861_v38 }
 0x323   :  { %v863_v51 = vpop.xlane.xlu0 %862  ;;  %v3712_v31 = vmul.f32 %v2840_v37, %v3600_v54  ;;  %v2233_v48 = vmul.f32 -1.442695, %v3709_v28 }
 0x324   :  { %v929_v8 = vadd.f32 1e-05, %v904_v40  ;;  %v905_v63 = vmul.f32 0.0078125, %v863_v51 }
 0x325   :  { %2849 = vpow2.f32 %v2233_v48  ;;  %v2234_v61 = vmul.f32 -1.442695, %v3712_v31 }
 0x326   :  { %2851 = vrsqrt.f32 %v929_v8  ;;  %v930_v57 = vadd.f32 1e-05, %v905_v63 }
 0x327   :  { %v2842_v46 = vpop.eup %2841  ;;  %2853 = vpow2.f32 %v2234_v61 }
 0x328   :  { %v2844_v36 = vpop.eup %2843  ;;  %v1073_v45 = vadd.f32 1.0, %v2842_v46  ;;  %2855 = vrsqrt.f32 %v930_v57 }
 0x329   :  { %v2846_v5 = vpop.eup %2845  ;;  %v865_v32 = vpop.xlane.xlu1 %864  ;;  %v3717_v26 = vmul.f32 %v2844_v36, %v3604_v50 }
 0x32a   :  { %v2848_v54 = vpop.eup %2847  ;;  %2857 = vrcp.f32 %v1073_v45  ;;  %v1074_v2 = vadd.f32 1.0, %v2846_v5  ;;  %v906_v10 = vmul.f32 0.0078125, %v865_v32 }
 0x32b   :  { %v867_v9 = vpop.xlane.xlu0 %866  ;;  %v3720_v49 = vmul.f32 %v2848_v54, %v3608_v43  ;;  %v2235_v16 = vmul.f32 -1.442695, %v3717_v26 }
 0x32c   :  { %2859 = vrcp.f32 %v1074_v2  ;;  %v931_v20 = vadd.f32 1e-05, %v906_v10  ;;  %v907_v11 = vmul.f32 0.0078125, %v867_v9 }
 0x32d   :  { %2861 = vpow2.f32 %v2235_v16  ;;  %v2236_v6 = vmul.f32 -1.442695, %v3720_v49 }
 0x32e   :  { %2863 = vrsqrt.f32 %v931_v20  ;;  %v932_v12 = vadd.f32 1e-05, %v907_v11 }
 0x32f   :  { %v2850_v50 = vpop.eup %2849  ;;  %2865 = vpow2.f32 %v2236_v6 }
 0x330   :  { %v2852_v53 = vpop.eup %2851  ;;  %2867 = vrsqrt.f32 %v932_v12  ;;  %v1075_v23 = vadd.f32 1.0, %v2850_v50 }
 0x331   :  { %v2854_v4 = vpop.eup %2853  ;;  %v869_v7 = vpop.xlane.xlu1 %868  ;;  %v3725_v43 = vmul.f32 %v2852_v53, %v3612_v59 }
 0x332   :  { %v2856_v21 = vpop.eup %2855  ;;  %v908_v22 = vmul.f32 0.0078125, %v869_v7  ;;  %v1076_v14 = vadd.f32 1.0, %v2854_v4  ;;  %2869 = vrcp.f32 %v1075_v23 }
 0x333   :  { %v871_v34 = vpop.xlane.xlu0 %870  ;;  %v3728_v24 = vmul.f32 %v2856_v21, %v3616_v3  ;;  %v2237_v55 = vmul.f32 -1.442695, %v3725_v43 }
 0x334   :  { %v2858_v29 = vpop.eup %2857  ;;  %v933_v30 = vadd.f32 1e-05, %v908_v22  ;;  %v909_v35 = vmul.f32 0.0078125, %v871_v34  ;;  %2871 = vrcp.f32 %v1076_v14 }
 0x335   :  { %2873 = vpow2.f32 %v2237_v55  ;;  %v2238_v38 = vmul.f32 -1.442695, %v3728_v24  ;;  %v1148_v51 = vmul.f32 %v2858_v29, %v3701_v41 }
 0x336   :  { %v2860_v37 = vpop.eup %2859  ;;  %2875 = vrsqrt.f32 %v933_v30  ;;  %v934_v59 = vadd.f32 1e-05, %v909_v35 }
 0x337   :  { %v2862_v40 = vpop.eup %2861  ;;  %v1149_v48 = vmul.f32 %v2860_v37, %v3705_v25  ;;  %2877 = vpow2.f32 %v2238_v38 }
 0x338   :  { %v2864_v3 = vpop.eup %2863  ;;  %2879 = vrsqrt.f32 %v934_v59  ;;  %v1077_v8 = vadd.f32 1.0, %v2862_v40 }
 0x339   :  { %v2866_v63 = vpop.eup %2865  ;;  %v873_v61 = vpop.xlane.xlu1 %872  ;;  %v1173_v57 = vpack.c.bf16 %v1149_v48, %v1148_v51  ;;  %v3735_v46 = vmul.f32 %v2864_v3, %v3620_v60 }
 0x33a   :  { %v2868_v36 = vpop.eup %2867  ;;  %v910_v45 = vmul.f32 0.0078125, %v873_v61  ;;  %v1078_v5 = vadd.f32 1.0, %v2866_v63  ;;  %2881 = vrcp.f32 %v1077_v8 }
 0x33b   :  { %2519 = vmatmul.mubr.bf16.vlgmr.msra.gmra.mrb[52].mxu0 %v1173_v57  ;;  %v875_v32 = vpop.xlane.xlu0 %874  ;;  %v3738_v41 = vmul.f32 %v2868_v36, %v3624_v62  ;;  %v2239_v25 = vmul.f32 -1.442695, %v3735_v46 }
 0x33c   :  { %v2870_v54 = vpop.eup %2869  ;;  %v935_v2 = vadd.f32 1e-05, %v910_v45  ;;  %v911_v10 = vmul.f32 0.0078125, %v875_v32  ;;  %2522 = vmatprep.mubr.msk.bf16.mxu0 %vm3134_vm0, %v3133_v0  ;;  %2883 = vrcp.f32 %v1078_v5 }
 0x33d   :  { %2885 = vpow2.f32 %v2239_v25  ;;  %v2240_v60 = vmul.f32 -1.442695, %v3738_v41  ;;  %v1150_v11 = vmul.f32 %v2870_v54, %v3709_v28 }
 0x33e   :  { %v2872_v9 = vpop.eup %2871  ;;  %2887 = vrsqrt.f32 %v935_v2  ;;  %v936_v16 = vadd.f32 1e-05, %v911_v10 }
 0x33f   :  { %v2874_v20 = vpop.eup %2873  ;;  %v1151_v62 = vmul.f32 %v2872_v9, %v3712_v31  ;;  %2889 = vpow2.f32 %v2240_v60 }
 0x340   :  { %v2876_v6 = vpop.eup %2875  ;;  %2891 = vrsqrt.f32 %v936_v16  ;;  %v1079_v12 = vadd.f32 1.0, %v2874_v20 }
 0x341   :  { %v2878_v50 = vpop.eup %2877  ;;  %v877_v53 = vpop.xlane.xlu1 %876  ;;  %v1174_v23 = vpack.c.bf16 %v1151_v62, %v1150_v11  ;;  %v3747_v4 = vmul.f32 %v2876_v6, %v3628_v39 }
 0x342   :  { %v2880_v7 = vpop.eup %2879  ;;  %v912_v21 = vmul.f32 0.0078125, %v877_v53  ;;  %v1080_v22 = vadd.f32 1.0, %v2878_v50  ;;  %2893 = vrcp.f32 %v1079_v12 }
 0x343   :  { %2523 = vmatmul.mubr.bf16.gmra.mrb[56].mxu0 %v1174_v23  ;;  %v879_v14 = vpop.xlane.xlu0 %878  ;;  %v3750_v28 = vmul.f32 %v2880_v7, %v3632_v13  ;;  %v2241_v31 = vmul.f32 -1.442695, %v3747_v4 }
 0x344   :  { %v2882_v34 = vpop.eup %2881  ;;  %v937_v55 = vadd.f32 1e-05, %v912_v21  ;;  %v913_v29 = vmul.f32 0.0078125, %v879_v14  ;;  %2526 = vmatprep.mubr.msk.bf16.mxu0 %vm3134_vm0, %v3133_v0  ;;  %2895 = vrcp.f32 %v1080_v22 }
 0x345   :  { %2897 = vpow2.f32 %v2241_v31  ;;  %v2242_v39 = vmul.f32 -1.442695, %v3750_v28  ;;  %v1152_v37 = vmul.f32 %v2882_v34, %v3717_v26 }
 0x346   :  { %v2884_v30 = vpop.eup %2883  ;;  %2899 = vrsqrt.f32 %v937_v55  ;;  %v938_v35 = vadd.f32 1e-05, %v913_v29 }
 0x347   :  { %v2886_v38 = vpop.eup %2885  ;;  %v1153_v13 = vmul.f32 %v2884_v30, %v3720_v49  ;;  %2901 = vpow2.f32 %v2242_v39 }
 0x348   :  { %v2888_v59 = vpop.eup %2887  ;;  %2903 = vrsqrt.f32 %v938_v35  ;;  %v1081_v40 = vadd.f32 1.0, %v2886_v38 }
 0x349   :  { %v2890_v51 = vpop.eup %2889  ;;  %v881_v48 = vpop.xlane.xlu1 %880  ;;  %v1175_v3 = vpack.c.bf16 %v1153_v13, %v1152_v37  ;;  %v3759_v8 = vmul.f32 %v2888_v59, %v3636_v17 }
 0x34a   :  { %v2892_v63 = vpop.eup %2891  ;;  %v914_v61 = vmul.f32 0.0078125, %v881_v48  ;;  %v1082_v57 = vadd.f32 1.0, %v2890_v51  ;;  %2905 = vrcp.f32 %v1081_v40 }
 0x34b   :  { %2527 = vmatmul.mubr.bf16.gmra.mrb[60].mxu0 %v1175_v3  ;;  %v883_v36 = vpop.xlane.xlu0 %882  ;;  %v3762_v26 = vmul.f32 %v2892_v63, %v3640_v52  ;;  %v2243_v49 = vmul.f32 -1.442695, %v3759_v8 }
 0x34c   :  { %v2894_v45 = vpop.eup %2893  ;;  %v939_v5 = vadd.f32 1e-05, %v914_v61  ;;  %v915_v32 = vmul.f32 0.0078125, %v883_v36  ;;  %2530 = vmatprep.mubr.msk.bf16.mxu0 %vm3134_vm0, %v3133_v0  ;;  %2907 = vrcp.f32 %v1082_v57 }
 0x34d   :  { %2909 = vpow2.f32 %v2243_v49  ;;  %v2244_v17 = vmul.f32 -1.442695, %v3762_v26  ;;  %v1154_v10 = vmul.f32 %v2894_v45, %v3725_v43 }
 0x34e   :  { %v2896_v25 = vpop.eup %2895  ;;  %2911 = vrsqrt.f32 %v939_v5  ;;  %v940_v54 = vadd.f32 1e-05, %v915_v32 }
 0x34f   :  { %v2898_v2 = vpop.eup %2897  ;;  %v1155_v52 = vmul.f32 %v2896_v25, %v3728_v24  ;;  %2913 = vpow2.f32 %v2244_v17 }
 0x350   :  { %v2900_v60 = vpop.eup %2899  ;;  %2915 = vrsqrt.f32 %v940_v54  ;;  %v1083_v9 = vadd.f32 1.0, %v2898_v2 }
 0x351   :  { %v2902_v16 = vpop.eup %2901  ;;  %v885_v20 = vpop.xlane.xlu1 %884  ;;  %v1176_v11 = vpack.c.bf16 %v1155_v52, %v1154_v10  ;;  %v3771_v62 = vmul.f32 %v2900_v60, %v3651_v19 }
 0x352   :  { %v2904_v6 = vpop.eup %2903  ;;  %v916_v12 = vmul.f32 0.0078125, %v885_v20  ;;  %v1084_v50 = vadd.f32 1.0, %v2902_v16  ;;  %2917 = vrcp.f32 %v1083_v9 }
 0x353   :  { %2531 = vmatmul.mubr.bf16.gmra.mrb[64].mxu0 %v1176_v11  ;;  %v887_v53 = vpop.xlane.xlu0 %886  ;;  %v3774_v43 = vmul.f32 %v2904_v6, %v3658_v42  ;;  %v2245_v24 = vmul.f32 -1.442695, %v3771_v62 }
 0x354   :  { %v2906_v23 = vpop.eup %2905  ;;  %v941_v7 = vadd.f32 1e-05, %v916_v12  ;;  %v917_v21 = vmul.f32 0.0078125, %v887_v53  ;;  %2534 = vmatprep.mubr.msk.bf16.mxu0 %vm3134_vm0, %v3133_v0  ;;  %2919 = vrcp.f32 %v1084_v50 }
 0x355   :  { %2921 = vpow2.f32 %v2245_v24  ;;  %v2246_v19 = vmul.f32 -1.442695, %v3774_v43  ;;  %v1156_v34 = vmul.f32 %v2906_v23, %v3735_v46 }
 0x356   :  { %v2908_v22 = vpop.eup %2907  ;;  %2923 = vrsqrt.f32 %v941_v7  ;;  %v942_v14 = vadd.f32 1e-05, %v917_v21 }
 0x357   :  { %v2910_v31 = vpop.eup %2909  ;;  %v1157_v42 = vmul.f32 %v2908_v22, %v3738_v41  ;;  %2925 = vpow2.f32 %v2246_v19 }
 0x358   :  { %v2912_v55 = vpop.eup %2911  ;;  %2927 = vrsqrt.f32 %v942_v14  ;;  %v1085_v29 = vadd.f32 1.0, %v2910_v31 }
 0x359   :  { %v2914_v39 = vpop.eup %2913  ;;  %v889_v30 = vpop.xlane.xlu1 %888  ;;  %v1177_v35 = vpack.c.bf16 %v1157_v42, %v1156_v34  ;;  %v3783_v38 = vmul.f32 %v2912_v55, %v3664_v18 }
 0x35a   :  { %v2916_v37 = vpop.eup %2915  ;;  %v918_v13 = vmul.f32 0.0078125, %v889_v30  ;;  %v1086_v59 = vadd.f32 1.0, %v2914_v39  ;;  %2929 = vrcp.f32 %v1085_v29 }
 0x35b   :  { %2535 = vmatmul.mubr.bf16.gmra.mrb[68].mxu0 %v1177_v35  ;;  %v891_v40 = vpop.xlane.xlu0 %890  ;;  %v3786_v46 = vmul.f32 %v2916_v37, %v3668_v47  ;;  %v2247_v41 = vmul.f32 -1.442695, %v3783_v38 }
 0x35c   :  { %v2918_v51 = vpop.eup %2917  ;;  %v943_v48 = vadd.f32 1e-05, %v918_v13  ;;  %v919_v3 = vmul.f32 0.0078125, %v891_v40  ;;  %2538 = vmatprep.mubr.msk.bf16.mxu0 %vm3134_vm0, %v3133_v0  ;;  %2931 = vrcp.f32 %v1086_v59 }
 0x35d   :  { %2933 = vpow2.f32 %v2247_v41  ;;  %v2248_v18 = vmul.f32 -1.442695, %v3786_v46  ;;  %v1158_v36 = vmul.f32 %v2918_v51, %v3747_v4 }
 0x35e   :  { %v2920_v63 = vpop.eup %2919  ;;  %2935 = vrsqrt.f32 %v943_v48  ;;  %v944_v61 = vadd.f32 1e-05, %v919_v3 }
 0x35f   :  { %v2922_v57 = vpop.eup %2921  ;;  %v1159_v47 = vmul.f32 %v2920_v63, %v3750_v28  ;;  %2937 = vpow2.f32 %v2248_v18 }
 0x360   :  { %v2924_v49 = vpop.eup %2923  ;;  %2939 = vrsqrt.f32 %v944_v61  ;;  %v1087_v45 = vadd.f32 1.0, %v2922_v57 }
 0x361   :  { %v2926_v5 = vpop.eup %2925  ;;  %v893_v32 = vpop.xlane.xlu1 %892  ;;  %v1178_v17 = vpack.c.bf16 %v1159_v47, %v1158_v36  ;;  %v3795_v25 = vmul.f32 %v2924_v49, %v3672_v27 }
 0x362   :  { %v2928_v54 = vpop.eup %2927  ;;  %v920_v2 = vmul.f32 0.0078125, %v893_v32  ;;  %v1088_v10 = vadd.f32 1.0, %v2926_v5  ;;  %2941 = vrcp.f32 %v1087_v45 }
 0x363   :  { %2539 = vmatmul.mubr.bf16.gmra.mrb[72].mxu0 %v1178_v17  ;;  %v895_v52 = vpop.xlane.xlu0 %894  ;;  %v3798_v4 = vmul.f32 %v2928_v54, %v3676_v33  ;;  %v2249_v28 = vmul.f32 -1.442695, %v3795_v25 }
 0x364   :  { %v2930_v60 = vpop.eup %2929  ;;  %v945_v9 = vadd.f32 1e-05, %v920_v2  ;;  %v921_v16 = vmul.f32 0.0078125, %v895_v52  ;;  %2542 = vmatprep.mubr.msk.bf16.mxu0 %vm3134_vm0, %v3133_v0  ;;  %2943 = vrcp.f32 %v1088_v10 }
 0x365   :  { %2945 = vpow2.f32 %v2249_v28  ;;  %v2250_v27 = vmul.f32 -1.442695, %v3798_v4  ;;  %v1160_v12 = vmul.f32 %v2930_v60, %v3759_v8 }
 0x366   :  { %v2932_v20 = vpop.eup %2931  ;;  %2947 = vrsqrt.f32 %v945_v9  ;;  %v946_v11 = vadd.f32 1e-05, %v921_v16 }
 0x367   :  { %v2934_v6 = vpop.eup %2933  ;;  %v1161_v33 = vmul.f32 %v2932_v20, %v3762_v26  ;;  %2949 = vpow2.f32 %v2250_v27 }
 0x368   :  { %v2936_v50 = vpop.eup %2935  ;;  %2951 = vrsqrt.f32 %v946_v11  ;;  %v1089_v53 = vadd.f32 1.0, %v2934_v6 }
 0x369   :  { %v2938_v24 = vpop.eup %2937  ;;  %v897_v23 = vpop.xlane.xlu1 %896  ;;  %v1179_v7 = vpack.c.bf16 %v1161_v33, %v1160_v12  ;;  %v3807_v21 = vmul.f32 %v2936_v50, %v3680_v58 }
 0x36a   :  { %v2940_v19 = vpop.eup %2939  ;;  %v922_v22 = vmul.f32 0.0078125, %v897_v23  ;;  %v1090_v14 = vadd.f32 1.0, %v2938_v24  ;;  %2953 = vrcp.f32 %v1089_v53  ;;  %v2675_v53 = vld [vmem:[%s4581_s4] sm:$0xff]  }
 0x36b   :  { %2543 = vmatmul.mubr.bf16.gmra.mrb[76].mxu0 %v1179_v7  ;;  %v3810_v31 = vmul.f32 %v2940_v19, %v3684_v44  ;;  %v2251_v8 = vmul.f32 -1.442695, %v3807_v21  ;;  %2646 = vmatpush3.bf16.msra.mxu1 %v2675_v53 }
 0x36c   :  { %v2942_v26 = vpop.eup %2941  ;;  %v947_v34 = vadd.f32 1e-05, %v922_v22  ;;  %2546 = vmatprep.mubr.msk.bf16.mxu0 %vm3134_vm0, %v3133_v0  ;;  %2955 = vrcp.f32 %v1090_v14  ;;  %2571 = vmatpush3.bf16.msra.mxu0 %v2675_v53 }
 0x36d   :  { %2957 = vpow2.f32 %v2251_v8  ;;  %v2252_v58 = vmul.f32 -1.442695, %v3810_v31  ;;  %v1162_v29 = vmul.f32 %v2942_v26, %v3771_v62  ;;  %2639 = vmatprep.subr.bf16.mxu1 %v3133_v0  ;;  %2572 = vmatprep.subr.bf16.mxu0 %v3133_v0 }
 0x36e   :  { %v2944_v42 = vpop.eup %2943  ;;  %2959 = vrsqrt.f32 %v947_v34 }
 0x36f   :  { %v2946_v55 = vpop.eup %2945  ;;  %v1163_v39 = vmul.f32 %v2944_v42, %v3774_v43  ;;  %2961 = vpow2.f32 %v2252_v58 }
 0x370   :  { %v2948_v44 = vpop.eup %2947  ;;  %v1091_v30 = vadd.f32 1.0, %v2946_v55 }
 0x371   :  { %v2950_v35 = vpop.eup %2949  ;;  %v1180_v37 = vpack.c.bf16 %v1163_v39, %v1162_v29  ;;  %v995_v13 = vmul.f32 %v2948_v44, %v3688_v56 }
 0x372   :  { %v2952_v59 = vpop.eup %2951  ;;  %v1092_v40 = vadd.f32 1.0, %v2950_v35  ;;  %2963 = vrcp.f32 %v1091_v30 }
 0x373   :  { %2547 = vmatmul.mubr.bf16.gmra.mrb[80].mxu0 %v1180_v37  ;;  %v996_v41 = vmul.f32 %v2952_v59, %v3692_v15  ;;  %v2253_v51 = vmul.f32 -1.442695, %v995_v13 }
 0x374   :  { %v2954_v48 = vpop.eup %2953  ;;  %2550 = vmatprep.mubr.msk.bf16.mxu0 %vm3134_vm0, %v3133_v0  ;;  %2965 = vrcp.f32 %v1092_v40 }
 0x375   :  { %2967 = vpow2.f32 %v2253_v51  ;;  %v2254_v62 = vmul.f32 -1.442695, %v996_v41  ;;  %v1164_v18 = vmul.f32 %v2954_v48, %v3783_v38 }
 0x376   :  { %v2956_v43 = vpop.eup %2955 }
 0x377   :  { %v2958_v3 = vpop.eup %2957  ;;  %v1165_v56 = vmul.f32 %v2956_v43, %v3786_v46  ;;  %2969 = vpow2.f32 %v2254_v62 }
 0x378   :  { %v2960_v63 = vpop.eup %2959  ;;  %v1093_v61 = vadd.f32 1.0, %v2958_v3 }
 0x379   :  { %v2962_v57 = vpop.eup %2961  ;;  %v1181_v36 = vpack.c.bf16 %v1165_v56, %v1164_v18  ;;  %v997_v15 = vmul.f32 %v2960_v63, %v3696_v1 }
 0x37a   :  { %v1094_v47 = vadd.f32 1.0, %v2962_v57  ;;  %2971 = vrcp.f32 %v1093_v61 }
 0x37b   :  { %2551 = vmatmul.mubr.bf16.gmra.mrb[84].mxu0 %v1181_v36  ;;  %v2255_v49 = vmul.f32 -1.442695, %v997_v15  ;;  %v2676_v36 = vld [vmem:[%s4581_s4 + $0x8] sm:$0xff]  }
 0x37c   :  { %v2964_v45 = vpop.eup %2963  ;;  %2554 = vmatprep.mubr.msk.bf16.mxu0 %vm3134_vm0, %v3133_v0  ;;  %2973 = vrcp.f32 %v1094_v47  ;;  %2647 = vmatpush3.bf16.msra.mxu1 %v2676_v36 }
 0x37d   :  { %2975 = vpow2.f32 %v2255_v49  ;;  %v1166_v46 = vmul.f32 %v2964_v45, %v3795_v25  ;;  %2573 = vmatpush3.bf16.msra.mxu0 %v2676_v36  ;;  %2640 = vmatprep.subr.bf16.mxu1 %v3133_v0 }
 0x37e   :  { %v2966_v38 = vpop.eup %2965  ;;  %2574 = vmatprep.subr.bf16.mxu0 %v3133_v0 }
 0x37f   :  { %v2968_v5 = vpop.eup %2967  ;;  %v1167_v32 = vmul.f32 %v2966_v38, %v3798_v4 }
 0x380   :  { %v1095_v17 = vadd.f32 1.0, %v2968_v5 }
 0x381   :  { %v2970_v54 = vpop.eup %2969  ;;  %v1182_v2 = vpack.c.bf16 %v1167_v32, %v1166_v46  ;;  %v2677_v46 = vld [vmem:[%s4581_s4 + $0x10] sm:$0xff]   ;;  %v2678_v32 = vld [vmem:[%s4581_s4 + $0x18] sm:$0xff]  }
 0x382   :  { %v1096_v1 = vadd.f32 1.0, %v2970_v54  ;;  %2977 = vrcp.f32 %v1095_v17  ;;  %2648 = vmatpush3.bf16.msra.mxu1 %v2677_v46  ;;  %2575 = vmatpush3.bf16.msra.mxu0 %v2677_v46 }
 0x383   :  { %2555 = vmatmul.mubr.bf16.gmra.mrb[88].mxu0 %v1182_v2  ;;  %2641 = vmatprep.subr.bf16.mxu1 %v3133_v0 }
 0x384   :  { %v2972_v10 = vpop.eup %2971  ;;  %2558 = vmatprep.mubr.msk.bf16.mxu0 %vm3134_vm0, %v3133_v0  ;;  %2979 = vrcp.f32 %v1096_v1  ;;  %2576 = vmatprep.subr.bf16.mxu0 %v3133_v0 }
 0x385   :  { %v1168_v60 = vmul.f32 %v2972_v10, %v3807_v21 }
 0x386   :  { %v2974_v52 = vpop.eup %2973  ;;  %2649 = vmatpush3.bf16.msra.mxu1 %v2678_v32  ;;  %2577 = vmatpush3.bf16.msra.mxu0 %v2678_v32 }
 0x387   :  { %v2976_v28 = vpop.eup %2975  ;;  %v1169_v9 = vmul.f32 %v2974_v52, %v3810_v31  ;;  %2642 = vmatprep.subr.bf16.mxu1 %v3133_v0  ;;  %2578 = vmatprep.subr.bf16.mxu0 %v3133_v0 }
 0x388   :  { %v1097_v25 = vadd.f32 1.0, %v2976_v28  ;;  %v2679_v28 = vld [vmem:[%s4581_s4 + $0x20] sm:$0xff]  }
 0x389   :  { %v1183_v16 = vpack.c.bf16 %v1169_v9, %v1168_v60  ;;  %v2680_v60 = vld [vmem:[%s4581_s4 + $0x28] sm:$0xff]  }
 0x38a   :  { %2981 = vrcp.f32 %v1097_v25  ;;  %2650 = vmatpush3.bf16.msra.mxu1 %v2679_v28  ;;  %2579 = vmatpush3.bf16.msra.mxu0 %v2679_v28 }
 0x38b   :  { %2559 = vmatmul.mubr.bf16.gmra.mrb[92].mxu0 %v1183_v16  ;;  %2643 = vmatprep.subr.bf16.mxu1 %v3133_v0 }
 0x38c   :  { %v2978_v4 = vpop.eup %2977  ;;  %2562 = vmatprep.mubr.msk.bf16.mxu0 %vm3134_vm0, %v3133_v0  ;;  %2580 = vmatprep.subr.bf16.mxu0 %v3133_v0 }
 0x38d   :  { %v1170_v20 = vmul.f32 %v2978_v4, %v995_v13 }
 0x38e   :  { %v2980_v27 = vpop.eup %2979  ;;  %2651 = vmatpush3.bf16.msra.mxu1 %v2680_v60  ;;  %2581 = vmatpush3.bf16.msra.mxu0 %v2680_v60 }
 0x38f   :  { %v1171_v11 = vmul.f32 %v2980_v27, %v996_v41  ;;  %2644 = vmatprep.subr.bf16.mxu1 %v3133_v0  ;;  %2582 = vmatprep.subr.bf16.mxu0 %v3133_v0 }
 0x391   :  { %v1184_v6 = vpack.c.bf16 %v1171_v11, %v1170_v20  ;;  %v2681_v11 = vld [vmem:[%s4581_s4 + $0x30] sm:$0xff]  }
 0x392   :  { %2652 = vmatpush3.bf16.msra.mxu1 %v2681_v11  ;;  %2583 = vmatpush3.bf16.msra.mxu0 %v2681_v11 }
 0x393   :  { %2563 = vmatmul.mubr.bf16.gmra.mrb[96].mxu0 %v1184_v6  ;;  %2645 = vmatprep.subr.bf16.mxu1 %v3133_v0  ;;  %v2682_v6 = vld [vmem:[%s4581_s4 + $0x38] sm:$0xff]  }
 0x394   :  { %v2982_v12 = vpop.eup %2981  ;;  %2566 = vmatprep.mubr.msk.bf16.mxu0 %vm3134_vm0, %v3133_v0  ;;  %2584 = vmatprep.subr.bf16.mxu0 %v3133_v0 }
 0x395   :  { %v1172_v33 = vmul.f32 %v2982_v12, %v997_v15 }
 0x396   :  { %2653 = vmatpush3.bf16.msra.mxu1 %v2682_v6  ;;  %2585 = vmatpush3.bf16.msra.mxu0 %v2682_v6 }
 0x397   :  { %v1185_v50 = vpack.c.bf16 %v1172_v33, %v1172_v33 }
 0x39b   :  { %2567 = vmatmul.mubr.bf16.gmra.mrb[100].mxu0 %v1185_v50 }
 0x39c   :  { %2586 = vmatprep.mubr.msk.bf16.mxu0 %vm3134_vm0, %v3133_v0 }
 0x40e   :  { %v3844_v24 = vpop.f32.mrb[52].mxu0 }
 0x40f   :  { %v2520_v23 = vpop.f32.mrb[53].mxu0 }
 0x410   :  { %v3846_v7 = vpop.f32.mrb[54].mxu0 }
 0x411   :  { %v2521_v21 = vpop.f32.mrb[55].mxu0 }
 0x416   :  { %v3848_v19 = vpop.f32.mrb[56].mxu0 }
 0x417   :  { %v2524_v22 = vpop.f32.mrb[57].mxu0  ;;  %v1388_v14 = vmul.f32 %v3848_v19, %v3848_v19 }
 0x418   :  { %v3852_v31 = vpop.f32.mrb[58].mxu0 }
 0x419   :  { %1415 = vadd.xlane.f32.xlu0 %v1388_v14  ;;  %v2525_v8 = vpop.f32.mrb[59].mxu0  ;;  %v1389_v26 = vmul.f32 %v3852_v31, %v3852_v31 }
 0x41b   :  { %1417 = vadd.xlane.f32.xlu1 %v1389_v26 }
 0x41e   :  { %v3856_v34 = vpop.f32.mrb[60].mxu0 }
 0x41f   :  { %v2528_v58 = vpop.f32.mrb[61].mxu0  ;;  %v1390_v42 = vmul.f32 %v3856_v34, %v3856_v34 }
 0x420   :  { %v3860_v55 = vpop.f32.mrb[62].mxu0 }
 0x421   :  { %1419 = vadd.xlane.f32.xlu0 %v1390_v42  ;;  %v2529_v29 = vpop.f32.mrb[63].mxu0  ;;  %v1391_v39 = vmul.f32 %v3860_v55, %v3860_v55 }
 0x423   :  { %1421 = vadd.xlane.f32.xlu1 %v1391_v39 }
 0x426   :  { %v3864_v44 = vpop.f32.mrb[64].mxu0 }
 0x427   :  { %v2532_v30 = vpop.f32.mrb[65].mxu0  ;;  %v1392_v35 = vmul.f32 %v3864_v44, %v3864_v44 }
 0x428   :  { %v3868_v37 = vpop.f32.mrb[66].mxu0 }
 0x429   :  { %1423 = vadd.xlane.f32.xlu0 %v1392_v35  ;;  %v2533_v13 = vpop.f32.mrb[67].mxu0  ;;  %v1393_v59 = vmul.f32 %v3868_v37, %v3868_v37 }
 0x42b   :  { %1425 = vadd.xlane.f32.xlu1 %v1393_v59 }
 0x42e   :  { %v3872_v40 = vpop.f32.mrb[68].mxu0 }
 0x42f   :  { %v2536_v41 = vpop.f32.mrb[69].mxu0  ;;  %v1394_v51 = vmul.f32 %v3872_v40, %v3872_v40 }
 0x430   :  { %v3876_v48 = vpop.f32.mrb[70].mxu0  ;;  %v1386_v41 = vmul.f32 %v3844_v24, %v3844_v24 }
 0x431   :  { %1427 = vadd.xlane.f32.xlu0 %v1394_v51  ;;  %v2537_v62 = vpop.f32.mrb[71].mxu0  ;;  %v1395_v43 = vmul.f32 %v3876_v48, %v3876_v48  ;;  %v1387_v51 = vmul.f32 %v3846_v7, %v3846_v7 }
 0x433   :  { %1429 = vadd.xlane.f32.xlu1 %v1395_v43 }
 0x436   :  { %v3880_v3 = vpop.f32.mrb[72].mxu0 }
 0x437   :  { %v2540_v18 = vpop.f32.mrb[73].mxu0  ;;  %v1396_v56 = vmul.f32 %v3880_v3, %v3880_v3 }
 0x438   :  { %v3884_v63 = vpop.f32.mrb[74].mxu0 }
 0x439   :  { %1431 = vadd.xlane.f32.xlu0 %v1396_v56  ;;  %v2541_v61 = vpop.f32.mrb[75].mxu0  ;;  %v1397_v57 = vmul.f32 %v3884_v63, %v3884_v63 }
 0x43b   :  { %1433 = vadd.xlane.f32.xlu1 %v1397_v57 }
 0x43e   :  { %v3891_v15 = vpop.f32.mrb[76].mxu0 }
 0x43f   :  { %v2544_v47 = vpop.f32.mrb[77].mxu0  ;;  %v1398_v49 = vmul.f32 %v3891_v15, %v3891_v15 }
 0x440   :  { %v3895_v45 = vpop.f32.mrb[78].mxu0 }
 0x441   :  { %1435 = vadd.xlane.f32.xlu0 %v1398_v49  ;;  %v2545_v38 = vpop.f32.mrb[79].mxu0  ;;  %v1399_v5 = vmul.f32 %v3895_v45, %v3895_v45 }
 0x443   :  { %1437 = vadd.xlane.f32.xlu1 %v1399_v5 }
 0x446   :  { %v3909_v17 = vpop.f32.mrb[80].mxu0 }
 0x447   :  { %v2548_v54 = vpop.f32.mrb[81].mxu0  ;;  %v1400_v2 = vmul.f32 %v3909_v17, %v3909_v17 }
 0x448   :  { %v3913_v1 = vpop.f32.mrb[82].mxu0 }
 0x449   :  { %1439 = vadd.xlane.f32.xlu0 %v1400_v2  ;;  %v2549_v10 = vpop.f32.mrb[83].mxu0  ;;  %v1401_v52 = vmul.f32 %v3913_v1, %v3913_v1 }
 0x44b   :  { %1441 = vadd.xlane.f32.xlu1 %v1401_v52 }
 0x44e   :  { %v3927_v9 = vpop.f32.mrb[84].mxu0 }
 0x44f   :  { %v2552_v25 = vpop.f32.mrb[85].mxu0  ;;  %v1402_v16 = vmul.f32 %v3927_v9, %v3927_v9 }
 0x450   :  { %v3931_v4 = vpop.f32.mrb[86].mxu0 }
 0x451   :  { %1443 = vadd.xlane.f32.xlu0 %v1402_v16  ;;  %v2553_v27 = vpop.f32.mrb[87].mxu0  ;;  %v1403_v20 = vmul.f32 %v3931_v4, %v3931_v4 }
 0x453   :  { %1445 = vadd.xlane.f32.xlu1 %v1403_v20 }
 0x456   :  { %v3945_v12 = vpop.f32.mrb[88].mxu0 }
 0x457   :  { %v2556_v33 = vpop.f32.mrb[89].mxu0  ;;  %v1404_v50 = vmul.f32 %v3945_v12, %v3945_v12 }
 0x458   :  { %v3949_v53 = vpop.f32.mrb[90].mxu0 }
 0x459   :  { %1447 = vadd.xlane.f32.xlu0 %v1404_v50  ;;  %v2557_v23 = vpop.f32.mrb[91].mxu0  ;;  %v1405_v21 = vmul.f32 %v3949_v53, %v3949_v53 }
 0x45b   :  { %1449 = vadd.xlane.f32.xlu1 %v1405_v21 }
 0x45e   :  { %v3953_v22 = vpop.f32.mrb[92].mxu0 }
 0x45f   :  { %v2560_v14 = vpop.f32.mrb[93].mxu0  ;;  %v1406_v8 = vmul.f32 %v3953_v22, %v3953_v22 }
 0x460   :  { %v3957_v26 = vpop.f32.mrb[94].mxu0 }
 0x461   :  { %1451 = vadd.xlane.f32.xlu0 %v1406_v8  ;;  %v2561_v58 = vpop.f32.mrb[95].mxu0  ;;  %v1407_v42 = vmul.f32 %v3957_v26, %v3957_v26 }
 0x463   :  { %1453 = vadd.xlane.f32.xlu1 %v1407_v42 }
 0x466   :  { %v3961_v29 = vpop.f32.mrb[96].mxu0 }
 0x467   :  { %v2564_v39 = vpop.f32.mrb[97].mxu0  ;;  %v1408_v30 = vmul.f32 %v3961_v29, %v3961_v29 }
 0x468   :  { %v3965_v35 = vpop.f32.mrb[98].mxu0 }
 0x469   :  { %1455 = vadd.xlane.f32.xlu0 %v1408_v30  ;;  %v2565_v13 = vpop.f32.mrb[99].mxu0  ;;  %v1409_v59 = vmul.f32 %v3965_v35, %v3965_v35 }
 0x46b   :  { %1457 = vadd.xlane.f32.xlu1 %v1409_v59 }
 0x46d   :  { %1411 = vadd.xlane.f32.xlu0 %v1386_v41 }
 0x46e   :  { %v3973_v62 = vpop.f32.mrb[100].mxu0 }
 0x46f   :  { %1413 = vadd.xlane.f32.xlu1 %v1387_v51  ;;  %v2568_v43 = vpop.f32.mrb[101].mxu0  ;;  %v1410_v18 = vmul.f32 %v3973_v62, %v3973_v62 }
 0x470   :  { %v1383_v56 = vpop.f32.mrb[102].mxu0 }
 0x471   :  { %1459 = vadd.xlane.f32.xlu0 %v1410_v18  ;;  %v2569_v61 = vpop.f32.mrb[103].mxu0 }
 0x4a6   :  { %v1416_v57 = vpop.xlane.xlu0 %1415 }
 0x4a7   :  { %v1463_v36 = vmul.f32 0.0078125, %v1416_v57 }
 0x4a8   :  { %v1418_v47 = vpop.xlane.xlu1 %1417 }
 0x4a9   :  { %v1488_v49 = vadd.f32 1e-05, %v1463_v36  ;;  %v1464_v38 = vmul.f32 0.0078125, %v1418_v47 }
 0x4ab   :  { %2983 = vrsqrt.f32 %v1488_v49  ;;  %v1489_v5 = vadd.f32 1e-05, %v1464_v38 }
 0x4ad   :  { %2985 = vrsqrt.f32 %v1489_v5 }
 0x4ae   :  { %v1420_v46 = vpop.xlane.xlu0 %1419 }
 0x4af   :  { %v1465_v32 = vmul.f32 0.0078125, %v1420_v46 }
 0x4b0   :  { %v1422_v54 = vpop.xlane.xlu1 %1421 }
 0x4b1   :  { %v1490_v2 = vadd.f32 1e-05, %v1465_v32  ;;  %v1466_v10 = vmul.f32 0.0078125, %v1422_v54 }
 0x4b3   :  { %2987 = vrsqrt.f32 %v1490_v2  ;;  %v1491_v52 = vadd.f32 1e-05, %v1466_v10 }
 0x4b5   :  { %v2984_v28 = vpop.eup %2983  ;;  %2989 = vrsqrt.f32 %v1491_v52 }
 0x4b6   :  { %v3978_v60 = vmul.f32 %v2984_v28, %v3848_v19  ;;  %v1424_v25 = vpop.xlane.xlu0 %1423 }
 0x4b7   :  { %v2986_v16 = vpop.eup %2985  ;;  %v1467_v27 = vmul.f32 0.0078125, %v1424_v25 }
 0x4b8   :  { %v2266_v20 = vmul.f32 -1.442695, %v3978_v60  ;;  %v3982_v11 = vmul.f32 %v2986_v16, %v3852_v31  ;;  %v1426_v6 = vpop.xlane.xlu1 %1425 }
 0x4b9   :  { %v1492_v33 = vadd.f32 1e-05, %v1467_v27  ;;  %v1468_v50 = vmul.f32 0.0078125, %v1426_v6 }
 0x4ba   :  { %2991 = vpow2.f32 %v2266_v20  ;;  %v2267_v23 = vmul.f32 -1.442695, %v3982_v11 }
 0x4bb   :  { %2993 = vrsqrt.f32 %v1492_v33  ;;  %v1493_v21 = vadd.f32 1e-05, %v1468_v50 }
 0x4bc   :  { %2995 = vpow2.f32 %v2267_v23 }
 0x4bd   :  { %v2988_v14 = vpop.eup %2987  ;;  %2997 = vrsqrt.f32 %v1493_v21 }
 0x4be   :  { %v1428_v19 = vpop.xlane.xlu0 %1427  ;;  %v3986_v8 = vmul.f32 %v2988_v14, %v3856_v34 }
 0x4bf   :  { %v2990_v58 = vpop.eup %2989  ;;  %v1469_v42 = vmul.f32 0.0078125, %v1428_v19 }
 0x4c0   :  { %v1430_v39 = vpop.xlane.xlu1 %1429  ;;  %v3989_v31 = vmul.f32 %v2990_v58, %v3860_v55  ;;  %v2268_v30 = vmul.f32 -1.442695, %v3986_v8 }
 0x4c1   :  { %v1494_v13 = vadd.f32 1e-05, %v1469_v42  ;;  %v1470_v59 = vmul.f32 0.0078125, %v1430_v39 }
 0x4c2   :  { %2999 = vpow2.f32 %v2268_v30  ;;  %v2269_v41 = vmul.f32 -1.442695, %v3989_v31 }
 0x4c3   :  { %3001 = vrsqrt.f32 %v1494_v13  ;;  %v1495_v51 = vadd.f32 1e-05, %v1470_v59 }
 0x4c4   :  { %v2992_v43 = vpop.eup %2991  ;;  %3003 = vpow2.f32 %v2269_v41 }
 0x4c5   :  { %v2994_v18 = vpop.eup %2993  ;;  %v1638_v34 = vadd.f32 1.0, %v2992_v43  ;;  %3005 = vrsqrt.f32 %v1495_v51 }
 0x4c6   :  { %v2996_v56 = vpop.eup %2995  ;;  %v1432_v61 = vpop.xlane.xlu0 %1431  ;;  %v3994_v57 = vmul.f32 %v2994_v18, %v3864_v44 }
 0x4c7   :  { %v2998_v55 = vpop.eup %2997  ;;  %3007 = vrcp.f32 %v1638_v34  ;;  %v1639_v36 = vadd.f32 1.0, %v2996_v56  ;;  %v1471_v47 = vmul.f32 0.0078125, %v1432_v61 }
 0x4c8   :  { %v1434_v49 = vpop.xlane.xlu1 %1433  ;;  %v3997_v38 = vmul.f32 %v2998_v55, %v3868_v37  ;;  %v2270_v5 = vmul.f32 -1.442695, %v3994_v57 }
 0x4c9   :  { %3009 = vrcp.f32 %v1639_v36  ;;  %v1496_v46 = vadd.f32 1e-05, %v1471_v47  ;;  %v1472_v32 = vmul.f32 0.0078125, %v1434_v49 }
 0x4ca   :  { %3011 = vpow2.f32 %v2270_v5  ;;  %v2271_v54 = vmul.f32 -1.442695, %v3997_v38 }
 0x4cb   :  { %3013 = vrsqrt.f32 %v1496_v46  ;;  %v1497_v2 = vadd.f32 1e-05, %v1472_v32 }
 0x4cc   :  { %v3000_v44 = vpop.eup %2999  ;;  %3015 = vpow2.f32 %v2271_v54 }
 0x4cd   :  { %v3002_v10 = vpop.eup %3001  ;;  %3017 = vrsqrt.f32 %v1497_v2  ;;  %v1640_v52 = vadd.f32 1.0, %v3000_v44 }
 0x4ce   :  { %v3004_v28 = vpop.eup %3003  ;;  %v1436_v25 = vpop.xlane.xlu0 %1435  ;;  %v4002_v37 = vmul.f32 %v3002_v10, %v3872_v40 }
 0x4cf   :  { %v3006_v16 = vpop.eup %3005  ;;  %v1473_v27 = vmul.f32 0.0078125, %v1436_v25  ;;  %v1641_v20 = vadd.f32 1.0, %v3004_v28  ;;  %3019 = vrcp.f32 %v1640_v52 }
 0x4d0   :  { %v1438_v6 = vpop.xlane.xlu1 %1437  ;;  %v4005_v33 = vmul.f32 %v3006_v16, %v3876_v48  ;;  %v2272_v50 = vmul.f32 -1.442695, %v4002_v37 }
 0x4d1   :  { %v3008_v23 = vpop.eup %3007  ;;  %v1498_v21 = vadd.f32 1e-05, %v1473_v27  ;;  %v1474_v14 = vmul.f32 0.0078125, %v1438_v6  ;;  %3021 = vrcp.f32 %v1641_v20 }
 0x4d2   :  { %3023 = vpow2.f32 %v2272_v50  ;;  %v2273_v19 = vmul.f32 -1.442695, %v4005_v33  ;;  %v1713_v39 = vmul.f32 %v3008_v23, %v3978_v60 }
 0x4d3   :  { %v3010_v58 = vpop.eup %3009  ;;  %3025 = vrsqrt.f32 %v1498_v21  ;;  %v1499_v40 = vadd.f32 1e-05, %v1474_v14 }
 0x4d4   :  { %v3012_v42 = vpop.eup %3011  ;;  %v1714_v30 = vmul.f32 %v3010_v58, %v3982_v11  ;;  %3027 = vpow2.f32 %v2273_v19 }
 0x4d5   :  { %v3014_v48 = vpop.eup %3013  ;;  %3029 = vrsqrt.f32 %v1499_v40  ;;  %v1642_v13 = vadd.f32 1.0, %v3012_v42 }
 0x4d6   :  { %v3016_v59 = vpop.eup %3015  ;;  %v1440_v41 = vpop.xlane.xlu0 %1439  ;;  %v1737_v51 = vpack.c.bf16 %v1714_v30, %v1713_v39  ;;  %v4012_v43 = vmul.f32 %v3014_v48, %v3880_v3 }
 0x4d7   :  { %v3018_v18 = vpop.eup %3017  ;;  %v1475_v34 = vmul.f32 0.0078125, %v1440_v41  ;;  %v1643_v56 = vadd.f32 1.0, %v3016_v59  ;;  %3031 = vrcp.f32 %v1642_v13 }
 0x4d8   :  { %2591 = vmatmul.mubr.bf16.vlgmr.msra.gmra.mrb[52].mxu1 %v1737_v51  ;;  %v1442_v61 = vpop.xlane.xlu1 %1441  ;;  %v4015_v60 = vmul.f32 %v3018_v18, %v3884_v63  ;;  %v2274_v11 = vmul.f32 -1.442695, %v4012_v43 }
 0x4d9   :  { %v3020_v55 = vpop.eup %3019  ;;  %v1500_v36 = vadd.f32 1e-05, %v1475_v34  ;;  %v1476_v47 = vmul.f32 0.0078125, %v1442_v61  ;;  %2594 = vmatprep.mubr.msk.bf16.mxu1 %vm3134_vm0, %v3133_v0  ;;  %3033 = vrcp.f32 %v1643_v56 }
 0x4da   :  { %3035 = vpow2.f32 %v2274_v11  ;;  %v2275_v3 = vmul.f32 -1.442695, %v4015_v60  ;;  %v1715_v32 = vmul.f32 %v3020_v55, %v3986_v8 }
 0x4db   :  { %v3022_v49 = vpop.eup %3021  ;;  %3037 = vrsqrt.f32 %v1500_v36  ;;  %v1501_v5 = vadd.f32 1e-05, %v1476_v47 }
 0x4dc   :  { %v3024_v46 = vpop.eup %3023  ;;  %v1716_v63 = vmul.f32 %v3022_v49, %v3989_v31  ;;  %3039 = vpow2.f32 %v2275_v3 }
 0x4dd   :  { %v3026_v54 = vpop.eup %3025  ;;  %3041 = vrsqrt.f32 %v1501_v5  ;;  %v1644_v2 = vadd.f32 1.0, %v3024_v46 }
 0x4de   :  { %v3028_v44 = vpop.eup %3027  ;;  %v1444_v10 = vpop.xlane.xlu0 %1443  ;;  %v1738_v52 = vpack.c.bf16 %v1716_v63, %v1715_v32  ;;  %v4024_v28 = vmul.f32 %v3026_v54, %v3891_v15 }
 0x4df   :  { %v3030_v25 = vpop.eup %3029  ;;  %v1477_v16 = vmul.f32 0.0078125, %v1444_v10  ;;  %v1645_v27 = vadd.f32 1.0, %v3028_v44  ;;  %3043 = vrcp.f32 %v1644_v2 }
 0x4e0   :  { %2595 = vmatmul.mubr.bf16.gmra.mrb[56].mxu1 %v1738_v52  ;;  %v1446_v20 = vpop.xlane.xlu1 %1445  ;;  %v4027_v8 = vmul.f32 %v3030_v25, %v3895_v45  ;;  %v2276_v31 = vmul.f32 -1.442695, %v4024_v28 }
 0x4e1   :  { %v3032_v6 = vpop.eup %3031  ;;  %v1502_v50 = vadd.f32 1e-05, %v1477_v16  ;;  %v1478_v23 = vmul.f32 0.0078125, %v1446_v20  ;;  %2598 = vmatprep.mubr.msk.bf16.mxu1 %vm3134_vm0, %v3133_v0  ;;  %3045 = vrcp.f32 %v1645_v27 }
 0x4e2   :  { %3047 = vpow2.f32 %v2276_v31  ;;  %v2277_v15 = vmul.f32 -1.442695, %v4027_v8  ;;  %v1717_v58 = vmul.f32 %v3032_v6, %v3994_v57 }
 0x4e3   :  { %v3034_v21 = vpop.eup %3033  ;;  %3049 = vrsqrt.f32 %v1502_v50  ;;  %v1503_v14 = vadd.f32 1e-05, %v1478_v23 }
 0x4e4   :  { %v3036_v19 = vpop.eup %3035  ;;  %v1718_v45 = vmul.f32 %v3034_v21, %v3997_v38  ;;  %3051 = vpow2.f32 %v2277_v15 }
 0x4e5   :  { %v3038_v40 = vpop.eup %3037  ;;  %3053 = vrsqrt.f32 %v1503_v14  ;;  %v1646_v42 = vadd.f32 1.0, %v3036_v19 }
 0x4e6   :  { %v3040_v39 = vpop.eup %3039  ;;  %v1448_v30 = vpop.xlane.xlu0 %1447  ;;  %v1739_v48 = vpack.c.bf16 %v1718_v45, %v1717_v58  ;;  %v4036_v13 = vmul.f32 %v3038_v40, %v3909_v17 }
 0x4e7   :  { %v3042_v59 = vpop.eup %3041  ;;  %v1479_v41 = vmul.f32 0.0078125, %v1448_v30  ;;  %v1647_v51 = vadd.f32 1.0, %v3040_v39  ;;  %3055 = vrcp.f32 %v1646_v42 }
 0x4e8   :  { %2599 = vmatmul.mubr.bf16.gmra.mrb[60].mxu1 %v1739_v48  ;;  %v1450_v18 = vpop.xlane.xlu1 %1449  ;;  %v4039_v57 = vmul.f32 %v3042_v59, %v3913_v1  ;;  %v2278_v38 = vmul.f32 -1.442695, %v4036_v13 }
 0x4e9   :  { %v3044_v34 = vpop.eup %3043  ;;  %v1504_v56 = vadd.f32 1e-05, %v1479_v41  ;;  %v1480_v61 = vmul.f32 0.0078125, %v1450_v18  ;;  %2602 = vmatprep.mubr.msk.bf16.mxu1 %vm3134_vm0, %v3133_v0  ;;  %3057 = vrcp.f32 %v1647_v51 }
 0x4ea   :  { %3059 = vpow2.f32 %v2278_v38  ;;  %v2279_v17 = vmul.f32 -1.442695, %v4039_v57  ;;  %v1719_v47 = vmul.f32 %v3044_v34, %v4002_v37 }
 0x4eb   :  { %v3046_v11 = vpop.eup %3045  ;;  %3061 = vrsqrt.f32 %v1504_v56  ;;  %v1505_v55 = vadd.f32 1e-05, %v1480_v61 }
 0x4ec   :  { %v3048_v36 = vpop.eup %3047  ;;  %v1720_v1 = vmul.f32 %v3046_v11, %v4005_v33  ;;  %3063 = vpow2.f32 %v2279_v17 }
 0x4ed   :  { %v3050_v3 = vpop.eup %3049  ;;  %3065 = vrsqrt.f32 %v1505_v55  ;;  %v1648_v49 = vadd.f32 1.0, %v3048_v36 }
 0x4ee   :  { %v3052_v5 = vpop.eup %3051  ;;  %v1452_v46 = vpop.xlane.xlu0 %1451  ;;  %v1740_v32 = vpack.c.bf16 %v1720_v1, %v1719_v47  ;;  %v4048_v63 = vmul.f32 %v3050_v3, %v3927_v9 }
 0x4ef   :  { %v3054_v54 = vpop.eup %3053  ;;  %v1481_v2 = vmul.f32 0.0078125, %v1452_v46  ;;  %v1649_v44 = vadd.f32 1.0, %v3052_v5  ;;  %3067 = vrcp.f32 %v1648_v49 }
 0x4f0   :  { %2603 = vmatmul.mubr.bf16.gmra.mrb[64].mxu1 %v1740_v32  ;;  %v1454_v10 = vpop.xlane.xlu1 %1453  ;;  %v4051_v37 = vmul.f32 %v3054_v54, %v3931_v4  ;;  %v2280_v33 = vmul.f32 -1.442695, %v4048_v63 }
 0x4f1   :  { %v3056_v52 = vpop.eup %3055  ;;  %v1506_v25 = vadd.f32 1e-05, %v1481_v2  ;;  %v1482_v16 = vmul.f32 0.0078125, %v1454_v10  ;;  %2606 = vmatprep.mubr.msk.bf16.mxu1 %vm3134_vm0, %v3133_v0  ;;  %3069 = vrcp.f32 %v1649_v44 }
 0x4f2   :  { %3071 = vpow2.f32 %v2280_v33  ;;  %v2281_v9 = vmul.f32 -1.442695, %v4051_v37  ;;  %v1721_v6 = vmul.f32 %v3056_v52, %v4012_v43 }
 0x4f3   :  { %v3058_v27 = vpop.eup %3057  ;;  %3073 = vrsqrt.f32 %v1506_v25  ;;  %v1507_v20 = vadd.f32 1e-05, %v1482_v16 }
 0x4f4   :  { %v3060_v31 = vpop.eup %3059  ;;  %v1722_v4 = vmul.f32 %v3058_v27, %v4015_v60  ;;  %3075 = vpow2.f32 %v2281_v9 }
 0x4f5   :  { %v3062_v50 = vpop.eup %3061  ;;  %3077 = vrsqrt.f32 %v1507_v20  ;;  %v1650_v23 = vadd.f32 1.0, %v3060_v31 }
 0x4f6   :  { %v3064_v15 = vpop.eup %3063  ;;  %v1456_v21 = vpop.xlane.xlu0 %1455  ;;  %v1741_v14 = vpack.c.bf16 %v1722_v4, %v1721_v6  ;;  %v4060_v19 = vmul.f32 %v3062_v50, %v3945_v12 }
 0x4f7   :  { %v3066_v58 = vpop.eup %3065  ;;  %v1483_v45 = vmul.f32 0.0078125, %v1456_v21  ;;  %v1651_v40 = vadd.f32 1.0, %v3064_v15  ;;  %3079 = vrcp.f32 %v1650_v23 }
 0x4f8   :  { %2607 = vmatmul.mubr.bf16.gmra.mrb[68].mxu1 %v1741_v14  ;;  %v1458_v42 = vpop.xlane.xlu1 %1457  ;;  %v4063_v43 = vmul.f32 %v3066_v58, %v3949_v53  ;;  %v2282_v60 = vmul.f32 -1.442695, %v4060_v19 }
 0x4f9   :  { %v3068_v39 = vpop.eup %3067  ;;  %v1508_v30 = vadd.f32 1e-05, %v1483_v45  ;;  %v1484_v48 = vmul.f32 0.0078125, %v1458_v42  ;;  %2610 = vmatprep.mubr.msk.bf16.mxu1 %vm3134_vm0, %v3133_v0  ;;  %3081 = vrcp.f32 %v1651_v40 }
 0x4fa   :  { %v1412_v12 = vpop.xlane.xlu0 %1411  ;;  %3083 = vpow2.f32 %v2282_v60  ;;  %v2283_v59 = vmul.f32 -1.442695, %v4063_v43  ;;  %v1723_v34 = vmul.f32 %v3068_v39, %v4024_v28 }
 0x4fb   :  { %v3070_v41 = vpop.eup %3069  ;;  %3085 = vrsqrt.f32 %v1508_v30  ;;  %v1509_v51 = vadd.f32 1e-05, %v1484_v48  ;;  %v1461_v18 = vmul.f32 0.0078125, %v1412_v12 }
 0x4fc   :  { %v3072_v38 = vpop.eup %3071  ;;  %v1414_v53 = vpop.xlane.xlu1 %1413  ;;  %v1724_v56 = vmul.f32 %v3070_v41, %v4027_v8  ;;  %3087 = vpow2.f32 %v2283_v59 }
 0x4fd   :  { %v3074_v61 = vpop.eup %3073  ;;  %3089 = vrsqrt.f32 %v1509_v51  ;;  %v1486_v17 = vadd.f32 1e-05, %v1461_v18  ;;  %v1462_v11 = vmul.f32 0.0078125, %v1414_v53  ;;  %v1652_v55 = vadd.f32 1.0, %v3072_v38 }
 0x4fe   :  { %v3076_v36 = vpop.eup %3075  ;;  %v1460_v47 = vpop.xlane.xlu0 %1459  ;;  %v1742_v1 = vpack.c.bf16 %v1724_v56, %v1723_v34  ;;  %v4072_v3 = vmul.f32 %v3074_v61, %v3953_v22 }
 0x4ff   :  { %v3078_v49 = vpop.eup %3077  ;;  %3091 = vrsqrt.f32 %v1486_v17  ;;  %v1487_v5 = vadd.f32 1e-05, %v1462_v11  ;;  %v1485_v46 = vmul.f32 0.0078125, %v1460_v47  ;;  %v1653_v32 = vadd.f32 1.0, %v3076_v36 }
 0x500   :  { %2611 = vmatmul.mubr.bf16.gmra.mrb[72].mxu1 %v1742_v1  ;;  %3093 = vrcp.f32 %v1652_v55  ;;  %v4075_v28 = vmul.f32 %v3078_v49, %v3957_v26  ;;  %v2284_v8 = vmul.f32 -1.442695, %v4072_v3 }
 0x501   :  { %v3080_v54 = vpop.eup %3079  ;;  %3095 = vrsqrt.f32 %v1487_v5  ;;  %v1510_v2 = vadd.f32 1e-05, %v1485_v46  ;;  %2614 = vmatprep.mubr.msk.bf16.mxu1 %vm3134_vm0, %v3133_v0 }
 0x502   :  { %3097 = vrcp.f32 %v1653_v32  ;;  %v2285_v22 = vmul.f32 -1.442695, %v4075_v28  ;;  %v1725_v33 = vmul.f32 %v3080_v54, %v4036_v13 }
 0x503   :  { %v3082_v44 = vpop.eup %3081  ;;  %3099 = vrsqrt.f32 %v1510_v2 }
 0x504   :  { %v3084_v10 = vpop.eup %3083  ;;  %v1726_v52 = vmul.f32 %v3082_v44, %v4039_v57  ;;  %3101 = vpow2.f32 %v2284_v8 }
 0x505   :  { %v3086_v26 = vpop.eup %3085  ;;  %v1654_v25 = vadd.f32 1.0, %v3084_v10  ;;  %3103 = vpow2.f32 %v2285_v22 }
 0x506   :  { %v3088_v16 = vpop.eup %3087  ;;  %v1743_v9 = vpack.c.bf16 %v1726_v52, %v1725_v33  ;;  %v4084_v27 = vmul.f32 %v3086_v26, %v3961_v29 }
 0x507   :  { %v3090_v20 = vpop.eup %3089  ;;  %v1655_v31 = vadd.f32 1.0, %v3088_v16  ;;  %3105 = vrcp.f32 %v1654_v25 }
 0x508   :  { %2615 = vmatmul.mubr.bf16.gmra.mrb[76].mxu1 %v1743_v9  ;;  %v4087_v6 = vmul.f32 %v3090_v20, %v3965_v35  ;;  %v2286_v13 = vmul.f32 -1.442695, %v4084_v27 }
 0x509   :  { %v3092_v4 = vpop.eup %3091  ;;  %2618 = vmatprep.mubr.msk.bf16.mxu1 %vm3134_vm0, %v3133_v0  ;;  %3107 = vrcp.f32 %v1655_v31 }
 0x50a   :  { %v3094_v57 = vpop.eup %3093  ;;  %v1536_v50 = vmul.f32 %v3092_v4, %v3844_v24  ;;  %3109 = vpow2.f32 %v2286_v13  ;;  %v2287_v29 = vmul.f32 -1.442695, %v4087_v6 }
 0x50b   :  { %v3096_v23 = vpop.eup %3095  ;;  %v1727_v58 = vmul.f32 %v3094_v57, %v4048_v63 }
 0x50c   :  { %v3098_v15 = vpop.eup %3097  ;;  %v2264_v21 = vmul.f32 -1.442695, %v1536_v50  ;;  %v1537_v14 = vmul.f32 %v3096_v23, %v3846_v7  ;;  %3111 = vpow2.f32 %v2287_v29 }
 0x50d   :  { %v3100_v35 = vpop.eup %3099  ;;  %v1728_v45 = vmul.f32 %v3098_v15, %v4051_v37 }
 0x50e   :  { %v3102_v40 = vpop.eup %3101  ;;  %3113 = vpow2.f32 %v2264_v21  ;;  %v2265_v42 = vmul.f32 -1.442695, %v1537_v14  ;;  %v1560_v60 = vmul.f32 %v3100_v35, %v3973_v62 }
 0x50f   :  { %v3104_v24 = vpop.eup %3103  ;;  %v1744_v39 = vpack.c.bf16 %v1728_v45, %v1727_v58  ;;  %v1656_v30 = vadd.f32 1.0, %v3102_v40 }
 0x510   :  { %3115 = vpow2.f32 %v2265_v42  ;;  %v1657_v48 = vadd.f32 1.0, %v3104_v24  ;;  %v2288_v12 = vmul.f32 -1.442695, %v1560_v60 }
 0x511   :  { %v3106_v59 = vpop.eup %3105  ;;  %2619 = vmatmul.mubr.bf16.gmra.mrb[80].mxu1 %v1744_v39  ;;  %3117 = vrcp.f32 %v1656_v30 }
 0x512   :  { %2622 = vmatprep.mubr.msk.bf16.mxu1 %vm3134_vm0, %v3133_v0  ;;  %3119 = vrcp.f32 %v1657_v48  ;;  %v1729_v37 = vmul.f32 %v3106_v59, %v4060_v19 }
 0x513   :  { %v3108_v7 = vpop.eup %3107  ;;  %3121 = vpow2.f32 %v2288_v12 }
 0x514   :  { %v3110_v63 = vpop.eup %3109  ;;  %v1730_v62 = vmul.f32 %v3108_v7, %v4063_v43 }
 0x515   :  { %v1658_v41 = vadd.f32 1.0, %v3110_v63 }
 0x516   :  { %v3112_v51 = vpop.eup %3111  ;;  %v1745_v18 = vpack.c.bf16 %v1730_v62, %v1729_v37 }
 0x517   :  { %v1659_v38 = vadd.f32 1.0, %v3112_v51  ;;  %3123 = vrcp.f32 %v1658_v41 }
 0x518   :  { %v3114_v53 = vpop.eup %3113 }
 0x519   :  { %v1636_v34 = vadd.f32 1.0, %v3114_v53  ;;  %2623 = vmatmul.mubr.bf16.gmra.mrb[84].mxu1 %v1745_v18  ;;  %3125 = vrcp.f32 %v1659_v38 }
 0x51a   :  { %v3116_v56 = vpop.eup %3115  ;;  %2626 = vmatprep.mubr.msk.bf16.mxu1 %vm3134_vm0, %v3133_v0 }
 0x51b   :  { %v3118_v61 = vpop.eup %3117  ;;  %3127 = vrcp.f32 %v1636_v34  ;;  %v1637_v17 = vadd.f32 1.0, %v3116_v56 }
 0x51c   :  { %v3120_v11 = vpop.eup %3119  ;;  %v1731_v43 = vmul.f32 %v3118_v61, %v4072_v3 }
 0x51d   :  { %v3122_v19 = vpop.eup %3121  ;;  %3129 = vrcp.f32 %v1637_v17  ;;  %v1732_v55 = vmul.f32 %v3120_v11, %v4075_v28 }
 0x51e   :  { %v1660_v36 = vadd.f32 1.0, %v3122_v19 }
 0x51f   :  { %v1746_v47 = vpack.c.bf16 %v1732_v55, %v1731_v43 }
 0x520   :  { %3131 = vrcp.f32 %v1660_v36 }
 0x521   :  { %v3124_v1 = vpop.eup %3123  ;;  %2627 = vmatmul.mubr.bf16.gmra.mrb[88].mxu1 %v1746_v47 }
 0x522   :  { %2630 = vmatprep.mubr.msk.bf16.mxu1 %vm3134_vm0, %v3133_v0  ;;  %v1733_v5 = vmul.f32 %v3124_v1, %v4084_v27 }
 0x523   :  { %v3126_v49 = vpop.eup %3125 }
 0x524   :  { %v1734_v46 = vmul.f32 %v3126_v49, %v4087_v6 }
 0x525   :  { %v3128_v32 = vpop.eup %3127 }
 0x526   :  { %v1747_v8 = vpack.c.bf16 %v1734_v46, %v1733_v5  ;;  %v1711_v2 = vmul.f32 %v3128_v32, %v1536_v50 }
 0x527   :  { %v3130_v54 = vpop.eup %3129 }
 0x528   :  { %v1712_v3 = vmul.f32 %v3130_v54, %v1537_v14 }
 0x529   :  { %2631 = vmatmul.mubr.bf16.gmra.mrb[92].mxu1 %v1747_v8 }
 0x52a   :  { %v3132_v28 = vpop.eup %3131  ;;  %v1736_v22 = vpack.c.bf16 %v1712_v3, %v1711_v2  ;;  %2634 = vmatprep.mubr.msk.bf16.mxu1 %vm3134_vm0, %v3133_v0 }
 0x52b   :  { %v1735_v44 = vmul.f32 %v3132_v28, %v1560_v60 }
 0x52c   :  { %2587 = vmatmul.mubr.bf16.vlgmr.msra.gmra.mrb[104].mxu0 %v1736_v22 }
 0x52d   :  { %v1748_v10 = vpack.c.bf16 %v1735_v44, %v1735_v44 }
 0x531   :  { %2635 = vmatmul.mubr.bf16.gmra.mrb[96].mxu1 %v1748_v10 }
 0x5ab   :  { %v4112_v33 = vpop.f32.mrb[52].mxu1 }
 0x5ac   :  { %2103 = vst.msk [vmem:[%s4582_s5 + $0x10] sm:$0xff] %vm1974_vm3, %v4112_v33  ;;  %v2592_v52 = vpop.f32.mrb[53].mxu1  ;;  %v1951_v36 = vmul.f32 %v4112_v33, %v4112_v33 }
 0x5ad   :  { %2129 = vst.msk [vmem:[%s4582_s5 + $0x10] sm:$0xff] %vm2126_vm4, %v3133_v0  ;;  %v4124_v26 = vpop.f32.mrb[54].mxu1 }
 0x5ae   :  { %2104 = vst.msk [vmem:[%s4582_s5 + $0x18] sm:$0xff] %vm1974_vm3, %v4124_v26  ;;  %v2593_v25 = vpop.f32.mrb[55].mxu1  ;;  %v1952_v5 = vmul.f32 %v4124_v26, %v4124_v26  ;;  %v1981_v3 = vsel %vm1974_vm3, %v1951_v36, 0.0 }
 0x5af   :  { %2130 = vst.msk [vmem:[%s4582_s5 + $0x18] sm:$0xff] %vm2126_vm4, %v3133_v0 }
 0x5b0   :  { %v1984_v44 = vsel %vm1974_vm3, %v1952_v5, 0.0 }
 0x5b3   :  { %v4136_v16 = vpop.f32.mrb[56].mxu1 }
 0x5b4   :  { %2105 = vst.msk [vmem:[%s4582_s5 + $0x20] sm:$0xff] %vm1974_vm3, %v4136_v16  ;;  %v2596_v9 = vpop.f32.mrb[57].mxu1  ;;  %v1953_v54 = vmul.f32 %v4136_v16, %v4136_v16 }
 0x5b5   :  { %2131 = vst.msk [vmem:[%s4582_s5 + $0x20] sm:$0xff] %vm2126_vm4, %v3133_v0  ;;  %v4148_v27 = vpop.f32.mrb[58].mxu1 }
 0x5b6   :  { %2106 = vst.msk [vmem:[%s4582_s5 + $0x28] sm:$0xff] %vm1974_vm3, %v4148_v27  ;;  %v2597_v20 = vpop.f32.mrb[59].mxu1  ;;  %v1954_v22 = vmul.f32 %v4148_v27, %v4148_v27  ;;  %v1987_v33 = vsel %vm1974_vm3, %v1953_v54, 0.0 }
 0x5b7   :  { %2132 = vst.msk [vmem:[%s4582_s5 + $0x28] sm:$0xff] %vm2126_vm4, %v3133_v0 }
 0x5b8   :  { %v1990_v52 = vsel %vm1974_vm3, %v1954_v22, 0.0 }
 0x5bb   :  { %v4160_v31 = vpop.f32.mrb[60].mxu1 }
 0x5bc   :  { %2107 = vst.msk [vmem:[%s4582_s5 + $0x30] sm:$0xff] %vm1974_vm3, %v4160_v31  ;;  %v2600_v6 = vpop.f32.mrb[61].mxu1  ;;  %v1955_v10 = vmul.f32 %v4160_v31, %v4160_v31 }
 0x5bd   :  { %2133 = vst.msk [vmem:[%s4582_s5 + $0x30] sm:$0xff] %vm2126_vm4, %v3133_v0  ;;  %v4172_v13 = vpop.f32.mrb[62].mxu1 }
 0x5be   :  { %2108 = vst.msk [vmem:[%s4582_s5 + $0x38] sm:$0xff] %vm1974_vm3, %v4172_v13  ;;  %v2601_v4 = vpop.f32.mrb[63].mxu1  ;;  %v1993_v25 = vsel %vm1974_vm3, %v1955_v10, 0.0 }
 0x5bf   :  { %2134 = vst.msk [vmem:[%s4582_s5 + $0x38] sm:$0xff] %vm2126_vm4, %v3133_v0 }
 0x5c3   :  { %v4184_v57 = vpop.f32.mrb[64].mxu1 }
 0x5c4   :  { %2109 = vst.msk [vmem:[%s4582_s5 + $0x40] sm:$0xff] %vm1974_vm3, %v4184_v57  ;;  %v2604_v50 = vpop.f32.mrb[65].mxu1  ;;  %v1957_v26 = vmul.f32 %v4184_v57, %v4184_v57 }
 0x5c5   :  { %2135 = vst.msk [vmem:[%s4582_s5 + $0x40] sm:$0xff] %vm2126_vm4, %v3133_v0  ;;  %v4196_v29 = vpop.f32.mrb[66].mxu1 }
 0x5c6   :  { %2110 = vst.msk [vmem:[%s4582_s5 + $0x48] sm:$0xff] %vm1974_vm3, %v4196_v29  ;;  %v2605_v23 = vpop.f32.mrb[67].mxu1  ;;  %v1958_v16 = vmul.f32 %v4196_v29, %v4196_v29  ;;  %v1999_v20 = vsel %vm1974_vm3, %v1957_v26, 0.0 }
 0x5c7   :  { %2136 = vst.msk [vmem:[%s4582_s5 + $0x48] sm:$0xff] %vm2126_vm4, %v3133_v0 }
 0x5c8   :  { %v2002_v6 = vsel %vm1974_vm3, %v1958_v16, 0.0 }
 0x5cb   :  { %v4208_v15 = vpop.f32.mrb[68].mxu1 }
 0x5cc   :  { %2111 = vst.msk [vmem:[%s4582_s5 + $0x50] sm:$0xff] %vm1974_vm3, %v4208_v15  ;;  %v2608_v21 = vpop.f32.mrb[69].mxu1  ;;  %v1959_v27 = vmul.f32 %v4208_v15, %v4208_v15 }
 0x5cd   :  { %2137 = vst.msk [vmem:[%s4582_s5 + $0x50] sm:$0xff] %vm2126_vm4, %v3133_v0  ;;  %v4220_v14 = vpop.f32.mrb[70].mxu1 }
 0x5ce   :  { %2112 = vst.msk [vmem:[%s4582_s5 + $0x58] sm:$0xff] %vm1974_vm3, %v4220_v14  ;;  %v2609_v35 = vpop.f32.mrb[71].mxu1  ;;  %v1960_v31 = vmul.f32 %v4220_v14, %v4220_v14  ;;  %v2005_v4 = vsel %vm1974_vm3, %v1959_v27, 0.0 }
 0x5cf   :  { %2138 = vst.msk [vmem:[%s4582_s5 + $0x58] sm:$0xff] %vm2126_vm4, %v3133_v0 }
 0x5d0   :  { %v2008_v50 = vsel %vm1974_vm3, %v1960_v31, 0.0 }
 0x5d3   :  { %v4232_v58 = vpop.f32.mrb[72].mxu1 }
 0x5d4   :  { %2113 = vst.msk [vmem:[%s4582_s5 + $0x60] sm:$0xff] %vm1974_vm3, %v4232_v58  ;;  %v2612_v45 = vpop.f32.mrb[73].mxu1 }
 0x5d5   :  { %2139 = vst.msk [vmem:[%s4582_s5 + $0x60] sm:$0xff] %vm2126_vm4, %v3133_v0  ;;  %v4244_v40 = vpop.f32.mrb[74].mxu1 }
 0x5d6   :  { %2114 = vst.msk [vmem:[%s4582_s5 + $0x68] sm:$0xff] %vm1974_vm3, %v4244_v40  ;;  %v2613_v42 = vpop.f32.mrb[75].mxu1  ;;  %v1962_v57 = vmul.f32 %v4244_v40, %v4244_v40 }
 0x5d7   :  { %2140 = vst.msk [vmem:[%s4582_s5 + $0x68] sm:$0xff] %vm2126_vm4, %v3133_v0 }
 0x5d8   :  { %v2014_v21 = vsel %vm1974_vm3, %v1962_v57, 0.0 }
 0x5db   :  { %v4256_v60 = vpop.f32.mrb[76].mxu1 }
 0x5dc   :  { %2115 = vst.msk [vmem:[%s4582_s5 + $0x70] sm:$0xff] %vm1974_vm3, %v4256_v60  ;;  %v2616_v24 = vpop.f32.mrb[77].mxu1  ;;  %v1963_v29 = vmul.f32 %v4256_v60, %v4256_v60 }
 0x5dd   :  { %2141 = vst.msk [vmem:[%s4582_s5 + $0x70] sm:$0xff] %vm2126_vm4, %v3133_v0  ;;  %v4268_v39 = vpop.f32.mrb[78].mxu1 }
 0x5de   :  { %2116 = vst.msk [vmem:[%s4582_s5 + $0x78] sm:$0xff] %vm1974_vm3, %v4268_v39  ;;  %v2617_v30 = vpop.f32.mrb[79].mxu1  ;;  %v1964_v15 = vmul.f32 %v4268_v39, %v4268_v39  ;;  %v2017_v35 = vsel %vm1974_vm3, %v1963_v29, 0.0 }
 0x5df   :  { %2142 = vst.msk [vmem:[%s4582_s5 + $0x78] sm:$0xff] %vm2126_vm4, %v3133_v0 }
 0x5e0   :  { %v2020_v45 = vsel %vm1974_vm3, %v1964_v15, 0.0 }
 0x5e4   :  { %v4280_v48 = vpop.f32.mrb[80].mxu1 }
 0x5e5   :  { %2117 = vst.msk [vmem:[%s4582_s5 + $0x80] sm:$0xff] %vm1974_vm3, %v4280_v48  ;;  %v2620_v12 = vpop.f32.mrb[81].mxu1  ;;  %v1965_v14 = vmul.f32 %v4280_v48, %v4280_v48 }
 0x5e6   :  { %2143 = vst.msk [vmem:[%s4582_s5 + $0x80] sm:$0xff] %vm2126_vm4, %v3133_v0  ;;  %v4292_v59 = vpop.f32.mrb[82].mxu1 }
 0x5e7   :  { %2118 = vst.msk [vmem:[%s4582_s5 + $0x88] sm:$0xff] %vm1974_vm3, %v4292_v59  ;;  %v2621_v7 = vpop.f32.mrb[83].mxu1  ;;  %v2023_v42 = vsel %vm1974_vm3, %v1965_v14, 0.0 }
 0x5e8   :  { %2144 = vst.msk [vmem:[%s4582_s5 + $0x88] sm:$0xff] %vm2126_vm4, %v3133_v0 }
 0x5ec   :  { %v4304_v63 = vpop.f32.mrb[84].mxu1 }
 0x5ed   :  { %2119 = vst.msk [vmem:[%s4582_s5 + $0x90] sm:$0xff] %vm1974_vm3, %v4304_v63  ;;  %v2624_v37 = vpop.f32.mrb[85].mxu1  ;;  %v1967_v40 = vmul.f32 %v4304_v63, %v4304_v63 }
 0x5ee   :  { %2145 = vst.msk [vmem:[%s4582_s5 + $0x90] sm:$0xff] %vm2126_vm4, %v3133_v0  ;;  %v4316_v62 = vpop.f32.mrb[86].mxu1 }
 0x5ef   :  { %2120 = vst.msk [vmem:[%s4582_s5 + $0x98] sm:$0xff] %vm1974_vm3, %v4316_v62  ;;  %v2625_v41 = vpop.f32.mrb[87].mxu1  ;;  %v1968_v60 = vmul.f32 %v4316_v62, %v4316_v62  ;;  %v2029_v30 = vsel %vm1974_vm3, %v1967_v40, 0.0 }
 0x5f0   :  { %2146 = vst.msk [vmem:[%s4582_s5 + $0x98] sm:$0xff] %vm2126_vm4, %v3133_v0 }
 0x5f1   :  { %v2032_v12 = vsel %vm1974_vm3, %v1968_v60, 0.0 }
 0x5f4   :  { %v4328_v51 = vpop.f32.mrb[88].mxu1 }
 0x5f5   :  { %2121 = vst.msk [vmem:[%s4582_s5 + $0xa0] sm:$0xff] %vm1974_vm3, %v4328_v51  ;;  %v2628_v18 = vpop.f32.mrb[89].mxu1  ;;  %v1969_v39 = vmul.f32 %v4328_v51, %v4328_v51 }
 0x5f6   :  { %2147 = vst.msk [vmem:[%s4582_s5 + $0xa0] sm:$0xff] %vm2126_vm4, %v3133_v0  ;;  %v4340_v38 = vpop.f32.mrb[90].mxu1 }
 0x5f7   :  { %2122 = vst.msk [vmem:[%s4582_s5 + $0xa8] sm:$0xff] %vm1974_vm3, %v4340_v38  ;;  %v2629_v53 = vpop.f32.mrb[91].mxu1  ;;  %v1970_v48 = vmul.f32 %v4340_v38, %v4340_v38  ;;  %v2035_v7 = vsel %vm1974_vm3, %v1969_v39, 0.0 }
 0x5f8   :  { %2148 = vst.msk [vmem:[%s4582_s5 + $0xa8] sm:$0xff] %vm2126_vm4, %v3133_v0 }
 0x5f9   :  { %v2038_v37 = vsel %vm1974_vm3, %v1970_v48, 0.0 }
 0x5fc   :  { %v4352_v34 = vpop.f32.mrb[92].mxu1 }
 0x5fd   :  { %2123 = vst.msk [vmem:[%s4582_s5 + $0xb0] sm:$0xff] %vm1974_vm3, %v4352_v34  ;;  %v2632_v56 = vpop.f32.mrb[93].mxu1 }
 0x5fe   :  { %2149 = vst.msk [vmem:[%s4582_s5 + $0xb0] sm:$0xff] %vm2126_vm4, %v3133_v0  ;;  %v4364_v61 = vpop.f32.mrb[94].mxu1 }
 0x5ff   :  { %2124 = vst.msk [vmem:[%s4582_s5 + $0xb8] sm:$0xff] %vm1974_vm3, %v4364_v61  ;;  %v2633_v17 = vpop.f32.mrb[95].mxu1  ;;  %v1847_v11 = vpop.f32.mrb[104].mxu0  ;;  %v1972_v63 = vmul.f32 %v4364_v61, %v4364_v61 }
 0x600   :  { %2150 = vst.msk [vmem:[%s4582_s5 + $0xb8] sm:$0xff] %vm2126_vm4, %v3133_v0  ;;  %v1949_v19 = vmul.f32 %v1847_v11, %v1847_v11  ;;  %v2588_v43 = vpop.f32.mrb[105].mxu0 }
 0x601   :  { %2101 = vst.msk [vmem:[%s4582_s5] sm:$0xff] %vm1974_vm3, %v1847_v11  ;;  %v1850_v55 = vpop.f32.mrb[106].mxu0  ;;  %v2044_v51 = vsel %vm1974_vm3, %v1972_v63, 0.0 }
 0x602   :  { %2127 = vst.msk [vmem:[%s4582_s5] sm:$0xff] %vm2126_vm4, %v3133_v0  ;;  %v1950_v47 = vmul.f32 %v1850_v55, %v1850_v55  ;;  %v2589_v1 = vpop.f32.mrb[107].mxu0  ;;  %v1975_v49 = vsel %vm1974_vm3, %v1949_v19, 0.0 }
 0x603   :  { %2102 = vst.msk [vmem:[%s4582_s5 + $0x8] sm:$0xff] %vm1974_vm3, %v1850_v55  ;;  %1976 = vadd.xlane.f32.xlu1 %v1975_v49 }
 0x604   :  { %2128 = vst.msk [vmem:[%s4582_s5 + $0x8] sm:$0xff] %vm2126_vm4, %v3133_v0  ;;  %v4399_v46 = vpop.f32.mrb[96].mxu1  ;;  %v1978_v32 = vsel %vm1974_vm3, %v1950_v47, 0.0 }
 0x605   :  { %2125 = vst.msk [vmem:[%s4582_s5 + $0xc0] sm:$0xff] %vm1974_vm3, %v4399_v46  ;;  %v2636_v8 = vpop.f32.mrb[97].mxu1  ;;  %1979 = vadd.xlane.f32.xlu0 %v1978_v32  ;;  %v1973_v62 = vmul.f32 %v4399_v46, %v4399_v46 }
 0x606   :  { %2151 = vst.msk [vmem:[%s4582_s5 + $0xc0] sm:$0xff] %vm2126_vm4, %v3133_v0  ;;  %v1946_v2 = vpop.f32.mrb[98].mxu1  ;;  %v1956_v0 = vmul.f32 %v4172_v13, %v4172_v13  ;;  %v1961_v13 = vmul.f32 %v4232_v58, %v4232_v58  ;;  %v1966_v58 = vmul.f32 %v4292_v59, %v4292_v59  ;;  %v1971_v59 = vmul.f32 %v4352_v34, %v4352_v34 }
 0x607   :  { %v2637_v28 = vpop.f32.mrb[99].mxu1  ;;  %1982 = vadd.xlane.f32.xlu1 %v1981_v3  ;;  %v2047_v18 = vsel %vm1974_vm3, %v1973_v62, 0.0 }
 0x608   :  { %v1996_v9 = vsel %vm1974_vm3, %v1956_v0, 0.0  ;;  %v2011_v23 = vsel %vm1974_vm3, %v1961_v13, 0.0  ;;  %v2026_v24 = vsel %vm1974_vm3, %v1966_v58, 0.0  ;;  %v2041_v41 = vsel %vm1974_vm3, %v1971_v59, 0.0 }
 0x609   :  { %1985 = vadd.xlane.f32.xlu0 %v1984_v44 }
 0x60b   :  { %1988 = vadd.xlane.f32.xlu1 %v1987_v33 }
 0x60d   :  { %1991 = vadd.xlane.f32.xlu0 %v1990_v52 }
 0x60f   :  { %1994 = vadd.xlane.f32.xlu1 %v1993_v25 }
 0x611   :  { %1997 = vadd.xlane.f32.xlu0 %v1996_v9 }
 0x613   :  { %2000 = vadd.xlane.f32.xlu1 %v1999_v20 }
 0x615   :  { %2003 = vadd.xlane.f32.xlu0 %v2002_v6 }
 0x617   :  { %2006 = vadd.xlane.f32.xlu1 %v2005_v4 }
 0x619   :  { %2009 = vadd.xlane.f32.xlu0 %v2008_v50 }
 0x61b   :  { %2012 = vadd.xlane.f32.xlu1 %v2011_v23 }
 0x61d   :  { %2015 = vadd.xlane.f32.xlu0 %v2014_v21 }
 0x61f   :  { %2018 = vadd.xlane.f32.xlu1 %v2017_v35 }
 0x621   :  { %2021 = vadd.xlane.f32.xlu0 %v2020_v45 }
 0x623   :  { %2024 = vadd.xlane.f32.xlu1 %v2023_v42 }
 0x625   :  { %2027 = vadd.xlane.f32.xlu0 %v2026_v24 }
 0x627   :  { %2030 = vadd.xlane.f32.xlu1 %v2029_v30 }
 0x629   :  { %2033 = vadd.xlane.f32.xlu0 %v2032_v12 }
 0x62b   :  { %2036 = vadd.xlane.f32.xlu1 %v2035_v7 }
 0x62d   :  { %2039 = vadd.xlane.f32.xlu0 %v2038_v37 }
 0x62f   :  { %2042 = vadd.xlane.f32.xlu1 %v2041_v41 }
 0x631   :  { %2045 = vadd.xlane.f32.xlu0 %v2044_v51 }
 0x633   :  { %2048 = vadd.xlane.f32.xlu1 %v2047_v18 }
 0x690   :  { %v1977_v38 = vpop.xlane.xlu1 %1976 }
 0x691   :  { %v2051_v53 = vmul.f32 0.033333335, %v1977_v38 }
 0x692   :  { %v1980_v34 = vpop.xlane.xlu0 %1979 }
 0x693   :  { %v2076_v56 = vmul.f32 0.5, %v2051_v53  ;;  %v2052_v61 = vmul.f32 0.033333335, %v1980_v34 }
 0x694   :  { %v1983_v17 = vpop.xlane.xlu1 %1982 }
 0x695   :  { %2153 = vst.msk [vmem:[%s4582_s5] sm:$0xff] %vm2152_vm5, %v2076_v56  ;;  %v2077_v11 = vmul.f32 0.5, %v2052_v61  ;;  %v2053_v19 = vmul.f32 0.033333335, %v1983_v17 }
 0x696   :  { %v1986_v43 = vpop.xlane.xlu0 %1985 }
 0x697   :  { %2154 = vst.msk [vmem:[%s4582_s5 + $0x8] sm:$0xff] %vm2152_vm5, %v2077_v11  ;;  %v2078_v55 = vmul.f32 0.5, %v2053_v19  ;;  %v2054_v36 = vmul.f32 0.033333335, %v1986_v43 }
 0x698   :  { %v1989_v47 = vpop.xlane.xlu1 %1988 }
 0x699   :  { %2155 = vst.msk [vmem:[%s4582_s5 + $0x10] sm:$0xff] %vm2152_vm5, %v2078_v55  ;;  %v2079_v1 = vmul.f32 0.5, %v2054_v36  ;;  %v2055_v49 = vmul.f32 0.033333335, %v1989_v47 }
 0x69a   :  { %v1992_v5 = vpop.xlane.xlu0 %1991 }
 0x69b   :  { %2156 = vst.msk [vmem:[%s4582_s5 + $0x18] sm:$0xff] %vm2152_vm5, %v2079_v1  ;;  %v2080_v46 = vmul.f32 0.5, %v2055_v49  ;;  %v2056_v32 = vmul.f32 0.033333335, %v1992_v5 }
 0x69c   :  { %v1995_v8 = vpop.xlane.xlu1 %1994 }
 0x69d   :  { %2157 = vst.msk [vmem:[%s4582_s5 + $0x20] sm:$0xff] %vm2152_vm5, %v2080_v46  ;;  %v2081_v54 = vmul.f32 0.5, %v2056_v32  ;;  %v2057_v2 = vmul.f32 0.033333335, %v1995_v8 }
 0x69e   :  { %v1998_v3 = vpop.xlane.xlu0 %1997 }
 0x69f   :  { %2158 = vst.msk [vmem:[%s4582_s5 + $0x28] sm:$0xff] %vm2152_vm5, %v2081_v54  ;;  %v2082_v28 = vmul.f32 0.5, %v2057_v2  ;;  %v2058_v22 = vmul.f32 0.033333335, %v1998_v3 }
 0x6a0   :  { %v2001_v44 = vpop.xlane.xlu1 %2000 }
 0x6a1   :  { %2159 = vst.msk [vmem:[%s4582_s5 + $0x30] sm:$0xff] %vm2152_vm5, %v2082_v28  ;;  %v2083_v10 = vmul.f32 0.5, %v2058_v22  ;;  %v2059_v33 = vmul.f32 0.033333335, %v2001_v44 }
 0x6a2   :  { %v2004_v0 = vpop.xlane.xlu0 %2003 }
 0x6a3   :  { %2160 = vst.msk [vmem:[%s4582_s5 + $0x38] sm:$0xff] %vm2152_vm5, %v2083_v10  ;;  %v2084_v52 = vmul.f32 0.5, %v2059_v33  ;;  %v2060_v26 = vmul.f32 0.033333335, %v2004_v0 }
 0x6a4   :  { %v2007_v25 = vpop.xlane.xlu1 %2006 }
 0x6a5   :  { %2161 = vst.msk [vmem:[%s4582_s5 + $0x40] sm:$0xff] %vm2152_vm5, %v2084_v52  ;;  %v2085_v16 = vmul.f32 0.5, %v2060_v26  ;;  %v2061_v9 = vmul.f32 0.033333335, %v2007_v25 }
 0x6a6   :  { %v2010_v27 = vpop.xlane.xlu0 %2009 }
 0x6a7   :  { %2162 = vst.msk [vmem:[%s4582_s5 + $0x48] sm:$0xff] %vm2152_vm5, %v2085_v16  ;;  %v2086_v20 = vmul.f32 0.5, %v2061_v9  ;;  %v2062_v31 = vmul.f32 0.033333335, %v2010_v27 }
 0x6a8   :  { %v2013_v6 = vpop.xlane.xlu1 %2012 }
 0x6a9   :  { %2163 = vst.msk [vmem:[%s4582_s5 + $0x50] sm:$0xff] %vm2152_vm5, %v2086_v20  ;;  %v2087_v13 = vmul.f32 0.5, %v2062_v31  ;;  %v2063_v4 = vmul.f32 0.033333335, %v2013_v6 }
 0x6aa   :  { %v2016_v57 = vpop.xlane.xlu0 %2015 }
 0x6ab   :  { %2164 = vst.msk [vmem:[%s4582_s5 + $0x58] sm:$0xff] %vm2152_vm5, %v2087_v13  ;;  %v2088_v50 = vmul.f32 0.5, %v2063_v4  ;;  %v2064_v29 = vmul.f32 0.033333335, %v2016_v57 }
 0x6ac   :  { %v2019_v23 = vpop.xlane.xlu1 %2018 }
 0x6ad   :  { %2165 = vst.msk [vmem:[%s4582_s5 + $0x60] sm:$0xff] %vm2152_vm5, %v2088_v50  ;;  %v2089_v15 = vmul.f32 0.5, %v2064_v29  ;;  %v2065_v21 = vmul.f32 0.033333335, %v2019_v23 }
 0x6ae   :  { %v2022_v14 = vpop.xlane.xlu0 %2021 }
 0x6af   :  { %2166 = vst.msk [vmem:[%s4582_s5 + $0x68] sm:$0xff] %vm2152_vm5, %v2089_v15  ;;  %v2090_v35 = vmul.f32 0.5, %v2065_v21  ;;  %v2066_v58 = vmul.f32 0.033333335, %v2022_v14 }
 0x6b0   :  { %v2025_v45 = vpop.xlane.xlu1 %2024 }
 0x6b1   :  { %2167 = vst.msk [vmem:[%s4582_s5 + $0x70] sm:$0xff] %vm2152_vm5, %v2090_v35  ;;  %v2091_v40 = vmul.f32 0.5, %v2066_v58  ;;  %v2067_v42 = vmul.f32 0.033333335, %v2025_v45 }
 0x6b2   :  { %v2028_v60 = vpop.xlane.xlu0 %2027 }
 0x6b3   :  { %2168 = vst.msk [vmem:[%s4582_s5 + $0x78] sm:$0xff] %vm2152_vm5, %v2091_v40  ;;  %v2092_v24 = vmul.f32 0.5, %v2067_v42  ;;  %v2068_v39 = vmul.f32 0.033333335, %v2028_v60 }
 0x6b4   :  { %v2031_v30 = vpop.xlane.xlu1 %2030 }
 0x6b5   :  { %2169 = vst.msk [vmem:[%s4582_s5 + $0x80] sm:$0xff] %vm2152_vm5, %v2092_v24  ;;  %v2093_v48 = vmul.f32 0.5, %v2068_v39  ;;  %v2069_v12 = vmul.f32 0.033333335, %v2031_v30 }
 0x6b6   :  { %v2034_v59 = vpop.xlane.xlu0 %2033 }
 0x6b7   :  { %2170 = vst.msk [vmem:[%s4582_s5 + $0x88] sm:$0xff] %vm2152_vm5, %v2093_v48  ;;  %v2094_v7 = vmul.f32 0.5, %v2069_v12  ;;  %v2070_v63 = vmul.f32 0.033333335, %v2034_v59 }
 0x6b8   :  { %v2037_v37 = vpop.xlane.xlu1 %2036 }
 0x6b9   :  { %2171 = vst.msk [vmem:[%s4582_s5 + $0x90] sm:$0xff] %vm2152_vm5, %v2094_v7  ;;  %v2095_v62 = vmul.f32 0.5, %v2070_v63  ;;  %v2071_v41 = vmul.f32 0.033333335, %v2037_v37 }
 0x6ba   :  { %v2040_v51 = vpop.xlane.xlu0 %2039 }
 0x6bb   :  { %2172 = vst.msk [vmem:[%s4582_s5 + $0x98] sm:$0xff] %vm2152_vm5, %v2095_v62  ;;  %v2096_v18 = vmul.f32 0.5, %v2071_v41  ;;  %v2072_v38 = vmul.f32 0.033333335, %v2040_v51 }
 0x6bc   :  { %v2043_v53 = vpop.xlane.xlu1 %2042 }
 0x6bd   :  { %2173 = vst.msk [vmem:[%s4582_s5 + $0xa0] sm:$0xff] %vm2152_vm5, %v2096_v18  ;;  %v2097_v34 = vmul.f32 0.5, %v2072_v38  ;;  %v2073_v56 = vmul.f32 0.033333335, %v2043_v53 }
 0x6be   :  { %v2046_v61 = vpop.xlane.xlu0 %2045 }
 0x6bf   :  { %2174 = vst.msk [vmem:[%s4582_s5 + $0xa8] sm:$0xff] %vm2152_vm5, %v2097_v34  ;;  %v2098_v17 = vmul.f32 0.5, %v2073_v56  ;;  %v2074_v11 = vmul.f32 0.033333335, %v2046_v61 }
 0x6c0   :  { %v2049_v19 = vpop.xlane.xlu1 %2048 }
 0x6c1   :  { %2175 = vst.msk [vmem:[%s4582_s5 + $0xb0] sm:$0xff] %vm2152_vm5, %v2098_v17  ;;  %v2099_v43 = vmul.f32 0.5, %v2074_v11  ;;  %v2075_v55 = vmul.f32 0.033333335, %v2049_v19 }
 0x6c3   :  { %2176 = vst.msk [vmem:[%s4582_s5 + $0xb8] sm:$0xff] %vm2152_vm5, %v2099_v43  ;;  %v2100_v36 = vmul.f32 0.5, %v2075_v55 }
 0x6c5   :  { %2177 = vst.msk [vmem:[%s4582_s5 + $0xc0] sm:$0xff] %vm2152_vm5, %v2100_v36 }

</bundles_post_ra>
